<compile_context>
chip_gen: v5e
topology: v5e:2x2
jax: 0.10.0
libtpu: 0.0.40
codegen_flags: <defaults>
</compile_context>

<pallas_src>
import jax
import jax.numpy as jnp
from jax.experimental import pallas as pl
from jax.experimental.pallas import tpu as pltpu

C_SE = 84    # squeeze channels  (Conv2d(84 -> 336))
C = 336      # main channels


def se_gate_conv_kernel(se_ref, x_ref, w1_ref, w2_ref, out_ref):
    # se_ref : [NB, C_SE+1, 1]  squeeze column per batch element + constant-1 bias lane (f32)
    # x_ref  : [NB, C, HW]      NCHW-native activation block (C = sublane, HW = lane), f32
    # w1_ref : [C, C_SE+1]      conv2d117 weight (Cout, Cin) with bias folded as last column, f32
    # w2_ref : [C, C]           conv2d118 weight (Cout, Cin), pre-cast to bf16 in the wrapper
    # out_ref: [NB, C, HW]
    nb = x_ref.shape[0]
    w1 = w1_ref[...]            # f32 gate weight (+bias column)
    w2 = w2_ref[...]            # bf16, no in-kernel cast

    for b in range(nb):         # nb is a trace-time constant -> unrolled, 2-D matmuls only
        # --- SE gate: relu -> (84->336) linear (bias via folded column) -> sigmoid. All f32.
        # relu(1) == 1, so applying relu to the augmented column keeps the bias lane intact.
        se_col = jnp.maximum(se_ref[b], 0.0)                                 # [C_SE+1, 1]
        g_col = jnp.dot(w1, se_col, preferred_element_type=jnp.float32)     # [C, 1] (MXU)
        # Approximate sigmoid via EUP reciprocal (~1e-3 rel. error vs exact sigmoid).
        gate = pl.reciprocal(1.0 + jnp.exp(-g_col), approx=True)            # [C, 1]

        # --- gate * x (broadcast over HW lanes), then (336->336) 1x1 conv as an MXU
        # matmul: out[:, hw] = w2 @ xg[:, hw].  bf16 operands, f32 accumulation.
        xg = (x_ref[b] * gate).astype(jnp.bfloat16)                          # [C, HW]
        out_ref[b] = jnp.dot(w2, xg,
                             preferred_element_type=jnp.float32).astype(out_ref.dtype)


def se_gate_conv(x367_nchw, x369_nchw, w1, b1, w2, *, batch_block=8):
    """x367_nchw: [N, 336, H, W], x369_nchw: [N, 84, 1, 1],
       w1: [336, 84, 1, 1], b1: [336], w2: [336, 336, 1, 1] -> [N, 336, H, W]."""
    N, Cm, H, W = x367_nchw.shape
    assert Cm == C
    HW = H * W

    # Batch elements per grid step (amortizes per-step overhead when N > 1).
    nb = max(1, min(batch_block, N))
    while N % nb:
        nb -= 1

    # Free reshapes only: NCHW stays NCHW (no transpose of the big activation).
    x = x367_nchw.reshape(N, C, HW)                                   # [N, 336, HW]
    se = x369_nchw.reshape(N, C_SE, 1)                                # [N, 84, 1]
    se_aug = jnp.concatenate(                                         # [N, 85, 1]
        [se, jnp.ones((N, 1, 1), se.dtype)], axis=1)
    # Weight used as-is [Cout, Cin]; bias folded in as an extra input column.
    w1_aug = jnp.concatenate(                                         # [336, 85]
        [w1.reshape(C, C_SE), b1.reshape(C, 1)], axis=1).astype(jnp.float32)
    # Pre-cast at "weight-prep" time: halves the dominant HBM stream of this
    # memory-bound kernel and removes the per-step in-kernel cast.
    w2_m = w2.reshape(C, C).astype(jnp.bfloat16)                      # [336, 336] bf16

    # TODO(synk): output kept f32 to match the PyTorch module; emit bf16 here if the
    # downstream consumer of x374 tolerates it (halves the output HBM stream).
    out = pl.pallas_call(
        se_gate_conv_kernel,
        out_shape=jax.ShapeDtypeStruct((N, C, HW), x367_nchw.dtype),
        grid_spec=pltpu.PrefetchScalarGridSpec(
            num_scalar_prefetch=0,
            grid=(N // nb,),
            in_specs=[
                pl.BlockSpec((nb, C_SE + 1, 1), lambda n: (n, 0, 0)),   # se (+bias lane)
                pl.BlockSpec((nb, C, HW), lambda n: (n, 0, 0)),         # x367 block
                pl.BlockSpec((C, C_SE + 1), lambda n: (0, 0)),          # w1 (+bias col)
                pl.BlockSpec((C, C), lambda n: (0, 0)),                 # w2 (bf16)
            ],
            out_specs=pl.BlockSpec((nb, C, HW), lambda n: (n, 0, 0)),
        ),
        compiler_params=pltpu.CompilerParams(
            dimension_semantics=("parallel",)),
    )(se_aug, x, w1_aug, w2_m)

    # [N, C, HW] -> NCHW (free reshape)
    return out.reshape(N, C, H, W)


def reference(x367, x369, w1, b1, w2):
    """Plain-JAX f32 reference of the PyTorch forward (1x1 convs as matmuls)."""
    N, _, H, W = x367.shape
    se = jnp.maximum(x369.reshape(N, C_SE), 0.0)
    g = se @ w1.reshape(C, C_SE).T + b1[None, :]
    g = jax.nn.sigmoid(g)                                     # [N, 336]
    xg = x367 * g[:, :, None, None]                           # broadcast over H, W
    xm = xg.reshape(N, C, H * W)
    om = jnp.einsum('oc,nch->noh', w2.reshape(C, C), xm)
    return om.reshape(N, C, H, W)


if __name__ == "__main__":
    key = jax.random.PRNGKey(0)
    k1, k2, k3, k4, k5 = jax.random.split(key, 5)

    N, H, W = 1, 14, 14                                       # shapes implied by the module
    x367 = jax.random.normal(k1, (N, C, H, W), dtype=jnp.float32)
    x369 = jax.random.normal(k2, (N, C_SE, 1, 1), dtype=jnp.float32)

    # Deterministic params (Conv2d(84,336,1) and Conv2d(336,336,1,bias=False))
    w1 = jax.random.normal(k3, (C, C_SE, 1, 1), dtype=jnp.float32) * 0.05
    b1 = jax.random.normal(k4, (C,), dtype=jnp.float32) * 0.05
    w2 = jax.random.normal(k5, (C, C, 1, 1), dtype=jnp.float32) * 0.05

    out = jax.block_until_ready(se_gate_conv(x367, x369, w1, b1, w2))
    ref = jax.block_until_ready(reference(x367, x369, w1, b1, w2))

    assert out.shape == (N, C, H, W), out.shape
    # bf16 MXU operands (f32 accumulation) + approx-sigmoid gate vs the pure-f32
    # reference: observed error is a few e-3; 2e-2 tolerance leaves comfortable margin.
    assert jnp.allclose(out, ref, atol=2e-2, rtol=2e-2), float(jnp.max(jnp.abs(out - ref)))
    print("KERNEL_OK")
</pallas_src>

<mosaic_0001>
module attributes {stable_mosaic.version = 11 : i64} {
  func.func @se_gate_conv_kernel(%arg0: i32, %arg1: memref<1x85x1xf32, #tpu.memory_space<vmem>>, %arg2: memref<1x336x196xf32, #tpu.memory_space<vmem>>, %arg3: memref<336x85xf32, #tpu.memory_space<vmem>>, %arg4: memref<336x336xbf16, #tpu.memory_space<vmem>>, %arg5: memref<1x336x196xf32, #tpu.memory_space<vmem>>) attributes {dimension_semantics = [#tpu.dimension_semantics<parallel>], iteration_bounds = array<i64: 1>, scalar_prefetch = 0 : i64, scratch_operands = 0 : i64, tpu.core_type = #tpu.core_type<tc>, window_params = [{transform_indices = @transform_0, window_bounds = array<i64: 1, 85, 1>}, {transform_indices = @transform_1, window_bounds = array<i64: 1, 336, 196>}, {pipeline_mode = #tpu.pipeline_mode<synchronous>, transform_indices = @transform_2, window_bounds = array<i64: 336, 85>}, {pipeline_mode = #tpu.pipeline_mode<synchronous>, transform_indices = @transform_3, window_bounds = array<i64: 336, 336>}, {transform_indices = @transform_4, window_bounds = array<i64: 1, 336, 196>}]} {
    %c0 = arith.constant 0 : index
    %c0_0 = arith.constant 0 : index
    %0 = vector.load %arg3[%c0, %c0_0] : memref<336x85xf32, #tpu.memory_space<vmem>>, vector<336x85xf32>
    %c0_1 = arith.constant 0 : index
    %c0_2 = arith.constant 0 : index
    %1 = vector.load %arg4[%c0_1, %c0_2] : memref<336x336xbf16, #tpu.memory_space<vmem>>, vector<336x336xbf16>
    %c0_3 = arith.constant 0 : index
    %c0_4 = arith.constant 0 : index
    %c0_5 = arith.constant 0 : index
    %2 = vector.load %arg1[%c0_3, %c0_4, %c0_5] : memref<1x85x1xf32, #tpu.memory_space<vmem>>, vector<1x85x1xf32>
    %3 = vector.shape_cast %2 : vector<1x85x1xf32> to vector<85x1xf32>
    %cst = arith.constant 0.000000e+00 : f32
    %4 = vector.broadcast %cst : f32 to vector<85x1xf32>
    %5 = arith.maximumf %3, %4 : vector<85x1xf32>
    %cst_6 = arith.constant dense<0.000000e+00> : vector<336x1xf32>
    %6 = tpu.matmul %0, %5, %cst_6 {dimension_numbers = #tpu.dot_dimension_numbers<[1], [0], [0], [1], [0, 0, 1, 1], [], []>} : vector<336x85xf32>, vector<85x1xf32>, vector<336x1xf32> -> vector<336x1xf32>
    %cst_7 = arith.constant 0.000000e+00 : f32
    %7 = vector.broadcast %cst_7 : f32 to vector<336x1xf32>
    %8 = arith.subf %7, %6 : vector<336x1xf32>
    %9 = math.exp %8 : vector<336x1xf32>
    %cst_8 = arith.constant 1.000000e+00 : f32
    %10 = vector.broadcast %cst_8 : f32 to vector<336x1xf32>
    %11 = arith.addf %10, %9 : vector<336x1xf32>
    %12 = tpu.reciprocal %11 {approx = true} : vector<336x1xf32> -> vector<336x1xf32>
    %c0_9 = arith.constant 0 : index
    %c0_10 = arith.constant 0 : index
    %c0_11 = arith.constant 0 : index
    %13 = vector.load %arg2[%c0_9, %c0_10, %c0_11] : memref<1x336x196xf32, #tpu.memory_space<vmem>>, vector<1x336x196xf32>
    %14 = vector.shape_cast %13 : vector<1x336x196xf32> to vector<336x196xf32>
    %15 = vector.broadcast %12 : vector<336x1xf32> to vector<336x196xf32>
    %16 = arith.mulf %14, %15 : vector<336x196xf32>
    %17 = arith.truncf %16 : vector<336x196xf32> to vector<336x196xbf16>
    %cst_12 = arith.constant dense<0.000000e+00> : vector<336x196xf32>
    %18 = tpu.matmul %1, %17, %cst_12 {dimension_numbers = #tpu.dot_dimension_numbers<[1], [0], [0], [1], [0, 0, 1, 1], [], []>} : vector<336x336xbf16>, vector<336x196xbf16>, vector<336x196xf32> -> vector<336x196xf32>
    %c0_13 = arith.constant 0 : index
    %c0_14 = arith.constant 0 : index
    %c0_15 = arith.constant 0 : index
    %19 = vector.load %arg5[%c0_13, %c0_14, %c0_15] : memref<1x336x196xf32, #tpu.memory_space<vmem>>, vector<1x336x196xf32>
    %20 = vector.shape_cast %19 : vector<1x336x196xf32> to vector<336x196xf32>
    %21 = vector.shape_cast %18 : vector<336x196xf32> to vector<1x336x196xf32>
    tpu.vector_store %arg5[%c0_13, %c0_14, %c0_15], %21 {strides = array<i32>} : memref<1x336x196xf32, #tpu.memory_space<vmem>>, vector<1x336x196xf32>,
    return
  }
  func.func @transform_0(%arg0: i32) -> (i32, i32, i32) {
    %c0_i32 = arith.constant 0 : i32
    %c0_i32_0 = arith.constant 0 : i32
    %c0_i32_1 = arith.constant 0 : i32
    return %arg0, %c0_i32, %c0_i32_0 : i32, i32, i32
  }
  func.func @transform_1(%arg0: i32) -> (i32, i32, i32) {
    %c0_i32 = arith.constant 0 : i32
    %c0_i32_0 = arith.constant 0 : i32
    %c0_i32_1 = arith.constant 0 : i32
    return %arg0, %c0_i32, %c0_i32_0 : i32, i32, i32
  }
  func.func @transform_2(%arg0: i32) -> (i32, i32) {
    %c0_i32 = arith.constant 0 : i32
    %c0_i32_0 = arith.constant 0 : i32
    %c0_i32_1 = arith.constant 0 : i32
    return %c0_i32, %c0_i32_0 : i32, i32
  }
  func.func @transform_3(%arg0: i32) -> (i32, i32) {
    %c0_i32 = arith.constant 0 : i32
    %c0_i32_0 = arith.constant 0 : i32
    %c0_i32_1 = arith.constant 0 : i32
    return %c0_i32, %c0_i32_0 : i32, i32
  }
  func.func @transform_4(%arg0: i32) -> (i32, i32, i32) {
    %c0_i32 = arith.constant 0 : i32
    %c0_i32_0 = arith.constant 0 : i32
    %c0_i32_1 = arith.constant 0 : i32
    return %arg0, %c0_i32, %c0_i32_0 : i32, i32, i32
  }
}

</mosaic_0001>

<bundles_post_ra>
// kernel: tpu_custom_call.1
= control target key start
LH: loop header
LB: loop body
LE: loop exit
PB: predicated region body
PF: predicated region fallthrough
CT: control target
= control target key end

     0   :  { %vm293_vm0 = vcmask 1044480   ;;  %vm166_vm1 = vcmask 695296   ;;  %v2818_v62 = vmov 0   ;;  %vm1385_vm2 = vcmask 654336   ;;  %s4650_s0 = inlined_call_operand.vmem [shape: f32[1,85,1], index: 0, kind: input, shape index: {}]   ;;  %s4651_s2 = inlined_call_operand.vmem [shape: f32[336,85], index: 2, kind: input, shape index: {}]   ;;  %s4652_s1 = inlined_call_operand.vmem [shape: f32[1,336,196], index: 1, kind: input, shape index: {}]   ;;  %s4653_s3 = inlined_call_operand.vmem [shape: bf16[336,336], index: 3, kind: input, shape index: {}]   ;;  %s4654_s4 = inlined_call_operand.vmem [shape: f32[1,336,196], index: 4, kind: output, shape index: {}]  }
   0x1   :  { %v154_v0 = vld [vmem:[%s4650_s0 + $0x50] sm:$0x1f]  ;;  %v153_v1 = vld [vmem:[%s4650_s0 + $0x48] sm:$0xff]  ;;  %v152_v2 = vld [vmem:[%s4650_s0 + $0x40] sm:$0xff]  ;;  %2649 = vset.pattern.permute.xlu2 %v2818_v62  ;;  %2648 = vset.pattern.permute.xlu1 %v2818_v62  ;;  %vm2134_vm3 = vcmask 556032  }
   0x2   :  { %v165_v3 = vmax.f32 %v154_v0, 0.0  ;;  %v164_v4 = vmax.f32 %v153_v1, 0.0  ;;  %v151_v5 = vld [vmem:[%s4650_s0 + $0x38] sm:$0xff]  ;;  %v163_v6 = vmax.f32 %v152_v2, 0.0  ;;  %v150_v7 = vld [vmem:[%s4650_s0 + $0x30] sm:$0xff]  ;;  %v149_v9 = vld [vmem:[%s4650_s0 + $0x28] sm:$0xff]  ;;  %2647 = vset.pattern.permute.xlu0 %v2818_v62 }
   0x3   :  { %v162_v8 = vmax.f32 %v151_v5, 0.0  ;;  %v161_v10 = vmax.f32 %v150_v7, 0.0  ;;  %v148_v11 = vld [vmem:[%s4650_s0 + $0x20] sm:$0xff]  ;;  %v160_v12 = vmax.f32 %v149_v9, 0.0  ;;  %v147_v13 = vld [vmem:[%s4650_s0 + $0x18] sm:$0xff]  ;;  %v146_v15 = vld [vmem:[%s4650_s0 + $0x10] sm:$0xff] }
   0x4   :  { %2222 = vmatpush.msk.msra.mxu0 %vm293_vm0, %v165_v3  ;;  %2622 = vmatpush.msk.msra.mxu2 %vm293_vm0, %v165_v3  ;;  %v159_v14 = vmax.f32 %v148_v11, 0.0  ;;  %v158_v16 = vmax.f32 %v147_v13, 0.0  ;;  %v145_v17 = vld [vmem:[%s4650_s0 + $0x8] sm:$0xff]  ;;  %v157_v18 = vmax.f32 %v146_v15, 0.0  ;;  %v144_v19 = vld [vmem:[%s4650_s0] sm:$0xff]  ;;  %v20_v26 = vld [vmem:[%s4651_s2 + $0x10] sm:$0xff] }
   0x5   :  { %v156_v20 = vmax.f32 %v145_v17, 0.0  ;;  %v155_v21 = vmax.f32 %v144_v19, 0.0  ;;  %v18_v22 = vld [vmem:[%s4651_s2] sm:$0xff]  ;;  %v19_v24 = vld [vmem:[%s4651_s2 + $0x8] sm:$0xff]  ;;  %v52_v27 = vld [vmem:[%s4651_s2 + $0x110] sm:$0xff] }
   0x6   :  { %303 = vmatpush.msra.mxu0 %v164_v4  ;;  %2623 = vmatpush.msra.mxu2 %v164_v4  ;;  %v50_v23 = vld [vmem:[%s4651_s2 + $0x100] sm:$0xff]  ;;  %v51_v25 = vld [vmem:[%s4651_s2 + $0x108] sm:$0xff]  ;;  %v21_v28 = vld [vmem:[%s4651_s2 + $0x18] sm:$0xff] }
   0x7   :  { %v53_v29 = vld [vmem:[%s4651_s2 + $0x118] sm:$0xff]  ;;  %v22_v30 = vld [vmem:[%s4651_s2 + $0x20] sm:$0xff]  ;;  %v23_v32 = vld [vmem:[%s4651_s2 + $0x28] sm:$0xff] }
   0x8   :  { %304 = vmatpush.msra.mxu0 %v163_v6  ;;  %2624 = vmatpush.msra.mxu2 %v163_v6  ;;  %v54_v31 = vld [vmem:[%s4651_s2 + $0x120] sm:$0xff]  ;;  %v55_v33 = vld [vmem:[%s4651_s2 + $0x128] sm:$0xff]  ;;  %v24_v34 = vld [vmem:[%s4651_s2 + $0x30] sm:$0xff] }
   0x9   :  { %v56_v35 = vld [vmem:[%s4651_s2 + $0x130] sm:$0xff]  ;;  %v25_v36 = vld [vmem:[%s4651_s2 + $0x38] sm:$0xff]  ;;  %v26_v38 = vld [vmem:[%s4651_s2 + $0x40] sm:$0xff] }
   0xa   :  { %305 = vmatpush.msra.mxu0 %v162_v8  ;;  %2625 = vmatpush.msra.mxu2 %v162_v8  ;;  %v57_v37 = vld [vmem:[%s4651_s2 + $0x138] sm:$0xff]  ;;  %v58_v39 = vld [vmem:[%s4651_s2 + $0x140] sm:$0xff]  ;;  %v27_v40 = vld [vmem:[%s4651_s2 + $0x48] sm:$0xff] }
   0xb   :  { %v59_v41 = vld [vmem:[%s4651_s2 + $0x148] sm:$0xff]  ;;  %v28_v42 = vld [vmem:[%s4651_s2 + $0x50] sm:$0xff]  ;;  %v29_v43 = vld [vmem:[%s4651_s2 + $0x58] sm:$0xff] }
   0xc   :  { %306 = vmatpush.msra.mxu0 %v161_v10  ;;  %2626 = vmatpush.msra.mxu2 %v161_v10  ;;  %v30_v44 = vld [vmem:[%s4651_s2 + $0x60] sm:$0xff]  ;;  %v31_v45 = vld [vmem:[%s4651_s2 + $0x68] sm:$0xff]  ;;  %v32_v46 = vld [vmem:[%s4651_s2 + $0x70] sm:$0xff] }
   0xd   :  { %v33_v47 = vld [vmem:[%s4651_s2 + $0x78] sm:$0xff]  ;;  %v34_v49 = vld [vmem:[%s4651_s2 + $0x80] sm:$0xff]  ;;  %v35_v52 = vld [vmem:[%s4651_s2 + $0x88] sm:$0xff] }
   0xe   :  { %307 = vmatpush.msra.mxu0 %v160_v12  ;;  %2627 = vmatpush.msra.mxu2 %v160_v12  ;;  %v36_v55 = vld [vmem:[%s4651_s2 + $0x90] sm:$0xff]  ;;  %v37_v58 = vld [vmem:[%s4651_s2 + $0x98] sm:$0xff]  ;;  %v38_v61 = vld [vmem:[%s4651_s2 + $0xa0] sm:$0xff] }
   0xf   :  { %v39_v2 = vld [vmem:[%s4651_s2 + $0xa8] sm:$0xff]  ;;  %v40_v7 = vld [vmem:[%s4651_s2 + $0xb0] sm:$0xff] }
  0x10   :  { %308 = vmatpush.msra.mxu0 %v159_v14  ;;  %2628 = vmatpush.msra.mxu2 %v159_v14 }
  0x12   :  { %309 = vmatpush.msra.mxu0 %v158_v16  ;;  %2629 = vmatpush.msra.mxu2 %v158_v16  ;;  %v41_v16 = vld [vmem:[%s4651_s2 + $0xb8] sm:$0xff] }
  0x14   :  { %310 = vmatpush.msra.mxu0 %v157_v18  ;;  %2630 = vmatpush.msra.mxu2 %v157_v18 }
  0x16   :  { %311 = vmatpush.msra.mxu0 %v156_v20  ;;  %2631 = vmatpush.msra.mxu2 %v156_v20 }
  0x18   :  { %312 = vmatpush.msra.mxu0 %v155_v21  ;;  %2632 = vmatpush.msra.mxu2 %v155_v21 }
  0x19   :  { %2223 = vmatmul.msk.f32.vlgmr.msra.gmra.mxu0 %vm166_vm1, %v18_v22  ;;  %2255 = vmatmul.msk.f32.vlgmr.msra.gmra.mxu2 %vm166_vm1, %v50_v23 }
  0x21   :  { %2224 = vmatmul.msk.f32.gmra.mxu0 %vm166_vm1, %v19_v24  ;;  %2256 = vmatmul.msk.f32.gmra.mxu2 %vm166_vm1, %v51_v25 }
  0x29   :  { %2225 = vmatmul.msk.f32.gmra.mxu0 %vm166_vm1, %v20_v26  ;;  %2257 = vmatmul.msk.f32.gmra.mxu2 %vm166_vm1, %v52_v27  ;;  %v42_v26 = vld [vmem:[%s4651_s2 + $0xc0] sm:$0xff] }
  0x31   :  { %2226 = vmatmul.msk.f32.gmra.mxu0 %vm166_vm1, %v21_v28  ;;  %2258 = vmatmul.msk.f32.gmra.mxu2 %vm166_vm1, %v53_v29 }
  0x39   :  { %2227 = vmatmul.msk.f32.gmra.mxu0 %vm166_vm1, %v22_v30  ;;  %2259 = vmatmul.msk.f32.gmra.mxu2 %vm166_vm1, %v54_v31 }
  0x41   :  { %2228 = vmatmul.msk.f32.gmra.mxu0 %vm166_vm1, %v23_v32  ;;  %2260 = vmatmul.msk.f32.gmra.mxu2 %vm166_vm1, %v55_v33 }
  0x49   :  { %2229 = vmatmul.msk.f32.gmra.mxu0 %vm166_vm1, %v24_v34  ;;  %2261 = vmatmul.msk.f32.gmra.mxu2 %vm166_vm1, %v56_v35 }
  0x51   :  { %2230 = vmatmul.msk.f32.gmra.mxu0 %vm166_vm1, %v25_v36  ;;  %2262 = vmatmul.msk.f32.gmra.mxu2 %vm166_vm1, %v57_v37  ;;  %v43_v37 = vld [vmem:[%s4651_s2 + $0xc8] sm:$0xff] }
  0x59   :  { %2231 = vmatmul.msk.f32.gmra.mxu0 %vm166_vm1, %v26_v38  ;;  %2263 = vmatmul.msk.f32.gmra.mxu2 %vm166_vm1, %v58_v39 }
  0x61   :  { %2232 = vmatmul.msk.f32.gmra.mxu0 %vm166_vm1, %v27_v40  ;;  %2264 = vmatmul.msk.f32.gmra.mxu2 %vm166_vm1, %v59_v41 }
  0x69   :  { %2233 = vmatmul.msk.f32.gmra.mxu0 %vm166_vm1, %v28_v42 }
  0x71   :  { %2234 = vmatmul.msk.f32.gmra.mxu0 %vm166_vm1, %v29_v43 }
  0x79   :  { %2235 = vmatmul.msk.f32.gmra.mxu0 %vm166_vm1, %v30_v44 }
  0x81   :  { %2236 = vmatmul.msk.f32.gmra.mxu0 %vm166_vm1, %v31_v45 }
  0x89   :  { %2237 = vmatmul.msk.f32.gmra.mxu0 %vm166_vm1, %v32_v46 }
  0x91   :  { %2238 = vmatmul.msk.f32.gmra.mxu0 %vm166_vm1, %v33_v47 }
  0x96   :  { %v2981_v48 = vpop.f32.mrf.mxu0 }
  0x99   :  { %2239 = vmatmul.msk.f32.gmra.mxu0 %vm166_vm1, %v34_v49 }
  0x9c   :  { %v2987_v50 = vpop.f32.mrf.mxu2 }
  0x9e   :  { %v2989_v51 = vpop.f32.mrf.mxu0 }
  0xa1   :  { %2240 = vmatmul.msk.f32.gmra.mxu0 %vm166_vm1, %v35_v52  ;;  %v44_v52 = vld [vmem:[%s4651_s2 + $0xd0] sm:$0xff] }
  0xa4   :  { %v2995_v53 = vpop.f32.mrf.mxu2 }
  0xa6   :  { %v2997_v54 = vpop.f32.mrf.mxu0 }
  0xa9   :  { %2241 = vmatmul.msk.f32.gmra.mxu0 %vm166_vm1, %v36_v55 }
  0xac   :  { %v3003_v56 = vpop.f32.mrf.mxu2 }
  0xae   :  { %v3005_v57 = vpop.f32.mrf.mxu0 }
  0xb1   :  { %2242 = vmatmul.msk.f32.gmra.mxu0 %vm166_vm1, %v37_v58 }
  0xb4   :  { %v3011_v59 = vpop.f32.mrf.mxu2 }
  0xb6   :  { %v3013_v60 = vpop.f32.mrf.mxu0 }
  0xb9   :  { %2243 = vmatmul.msk.f32.gmra.mxu0 %vm166_vm1, %v38_v61 }
  0xbc   :  { %v422_v63 = vpop.f32.mrf.mxu2 }
  0xbd   :  { %v476_v0 = vsub.f32 0.0, %v422_v63 }
  0xbe   :  { %v3019_v1 = vpop.f32.mrf.mxu0 }
  0xbf   :  { %v554_v3 = vmul.f32 1.442695, %v476_v0 }
  0xc1   :  { %2650 = vpow2.f32 %v554_v3  ;;  %2244 = vmatmul.msk.f32.gmra.mxu0 %vm166_vm1, %v39_v2 }
  0xc4   :  { %v425_v4 = vpop.f32.mrf.mxu2 }
  0xc5   :  { %v477_v5 = vsub.f32 0.0, %v425_v4  ;;  %v475_v4 = vsub.f32 0.0, %v3011_v59 }
  0xc6   :  { %v332_v6 = vpop.f32.mrf.mxu0 }
  0xc7   :  { %v2651_v8 = vpop.eup %2650  ;;  %v556_v9 = vmul.f32 1.442695, %v477_v5  ;;  %v446_v10 = vsub.f32 0.0, %v332_v6 }
  0xc8   :  { %v602_v11 = vadd.f32 1.0, %v2651_v8 }
  0xc9   :  { %2652 = vpow2.f32 %v556_v9  ;;  %v494_v12 = vmul.f32 1.442695, %v446_v10  ;;  %2245 = vmatmul.msk.f32.gmra.mxu0 %vm166_vm1, %v40_v7  ;;  %v45_v7 = vld [vmem:[%s4651_s2 + $0xd8] sm:$0xff] }
  0xca   :  { %2654 = vrcp.f32 %v602_v11 }
  0xcb   :  { %2656 = vpow2.f32 %v494_v12  ;;  %v552_v12 = vmul.f32 1.442695, %v475_v4 }
  0xcc   :  { %v428_v13 = vpop.f32.mrf.mxu2 }
  0xcd   :  { %v478_v14 = vsub.f32 0.0, %v428_v13 }
  0xce   :  { %v3029_v15 = vpop.f32.mrf.mxu0 }
  0xcf   :  { %v2653_v17 = vpop.eup %2652  ;;  %v558_v18 = vmul.f32 1.442695, %v478_v14 }
  0xd0   :  { %v2655_v19 = vpop.eup %2654  ;;  %v603_v20 = vadd.f32 1.0, %v2653_v17 }
  0xd1   :  { %v2657_v21 = vpop.eup %2656  ;;  %2658 = vpow2.f32 %v558_v18  ;;  %2246 = vmatmul.msk.f32.gmra.mxu0 %vm166_vm1, %v41_v16  ;;  %916 = vperm.xlu0 %2647, %v2655_v19   ;;  %v472_v16 = vsub.f32 0.0, %v2987_v50  ;;  %v46_v18 = vld [vmem:[%s4651_s2 + $0xe0] sm:$0xff] }
  0xd2   :  { %2660 = vrcp.f32 %v603_v20  ;;  %v572_v22 = vadd.f32 1.0, %v2657_v21 }
  0xd4   :  { %2662 = vrcp.f32 %v572_v22  ;;  %v431_v23 = vpop.f32.mrf.mxu2  ;;  %v546_v22 = vmul.f32 1.442695, %v472_v16 }
  0xd5   :  { %v479_v24 = vsub.f32 0.0, %v431_v23  ;;  %v474_v23 = vsub.f32 0.0, %v3003_v56  ;;  %v47_v56 = vld [vmem:[%s4651_s2 + $0xe8] sm:$0xff] }
  0xd6   :  { %v338_v25 = vpop.f32.mrf.mxu0 }
  0xd7   :  { %v2659_v27 = vpop.eup %2658  ;;  %v560_v28 = vmul.f32 1.442695, %v479_v24  ;;  %v448_v29 = vsub.f32 0.0, %v338_v25 }
  0xd8   :  { %v2661_v30 = vpop.eup %2660  ;;  %v604_v31 = vadd.f32 1.0, %v2659_v27  ;;  %v550_v27 = vmul.f32 1.442695, %v474_v23 }
  0xd9   :  { %2664 = vpow2.f32 %v560_v28  ;;  %v498_v32 = vmul.f32 1.442695, %v448_v29  ;;  %2247 = vmatmul.msk.f32.gmra.mxu0 %vm166_vm1, %v42_v26  ;;  %921 = vperm.xlu1 %2648, %v2661_v30   ;;  %v443_v28 = vsub.f32 0.0, %v3005_v57 }
  0xda   :  { %v2663_v33 = vpop.eup %2662  ;;  %2666 = vrcp.f32 %v604_v31 }
  0xdb   :  { %2668 = vpow2.f32 %v498_v32  ;;  %766 = vperm.xlu2 %2649, %v2663_v33  }
  0xdc   :  { %v434_v34 = vpop.f32.mrf.mxu2 }
  0xdd   :  { %v480_v35 = vsub.f32 0.0, %v434_v34  ;;  %v488_v34 = vmul.f32 1.442695, %v443_v28 }
  0xde   :  { %v341_v36 = vpop.f32.mrf.mxu0 }
  0xdf   :  { %v2665_v38 = vpop.eup %2664  ;;  %v562_v39 = vmul.f32 1.442695, %v480_v35  ;;  %v449_v40 = vsub.f32 0.0, %v341_v36 }
  0xe0   :  { %v2667_v41 = vpop.eup %2666  ;;  %v605_v42 = vadd.f32 1.0, %v2665_v38 }
  0xe1   :  { %v2669_v43 = vpop.eup %2668  ;;  %2670 = vpow2.f32 %v562_v39  ;;  %v500_v44 = vmul.f32 1.442695, %v449_v40  ;;  %2248 = vmatmul.msk.f32.gmra.mxu0 %vm166_vm1, %v43_v37  ;;  %v445_v39 = vsub.f32 0.0, %v3019_v1 }
  0xe2   :  { %2672 = vrcp.f32 %v605_v42  ;;  %v574_v45 = vadd.f32 1.0, %v2669_v43 }
  0xe3   :  { %926 = vperm.xlu2 %2649, %v2667_v41   ;;  %v48_v41 = vld [vmem:[%s4651_s2 + $0xf0] sm:$0xff] }
  0xe4   :  { %2674 = vrcp.f32 %v574_v45  ;;  %v437_v46 = vpop.f32.mrf.mxu2 }
  0xe5   :  { %2676 = vpow2.f32 %v500_v44  ;;  %v481_v47 = vsub.f32 0.0, %v437_v46 }
  0xe6   :  { %v344_v49 = vpop.f32.mrf.mxu0 }
  0xe7   :  { %v2671_v55 = vpop.eup %2670  ;;  %v450_v58 = vsub.f32 0.0, %v344_v49  ;;  %v564_v61 = vmul.f32 1.442695, %v481_v47  ;;  %v492_v49 = vmul.f32 1.442695, %v445_v39 }
  0xe8   :  { %v2673_v62 = vpop.eup %2672  ;;  %v606_v63 = vadd.f32 1.0, %v2671_v55 }
  0xe9   :  { %v502_v0 = vmul.f32 1.442695, %v450_v58  ;;  %2249 = vmatmul.msk.f32.gmra.mxu0 %vm166_vm1, %v44_v52  ;;  %2678 = vpow2.f32 %v564_v61  ;;  %931 = vperm.xlu0 %2647, %v2673_v62   ;;  %v442_v58 = vsub.f32 0.0, %v2997_v54 }
  0xea   :  { %v2675_v2 = vpop.eup %2674  ;;  %2680 = vrcp.f32 %v606_v63  ;;  %v49_v63 = vld [vmem:[%s4651_s2 + $0xf8] sm:$0xff] }
  0xeb   :  { %v2677_v3 = vpop.eup %2676  ;;  %2682 = vpow2.f32 %v502_v0  ;;  %776 = vperm.xlu1 %2648, %v2675_v2   ;;  %v447_v0 = vsub.f32 0.0, %v3029_v15 }
  0xec   :  { %v575_v5 = vadd.f32 1.0, %v2677_v3 }
  0xee   :  { %v347_v6 = vpop.f32.mrf.mxu0  ;;  %2684 = vrcp.f32 %v575_v5 }
  0xef   :  { %v2679_v8 = vpop.eup %2678  ;;  %v451_v9 = vsub.f32 0.0, %v347_v6 }
  0xf0   :  { %v2681_v10 = vpop.eup %2680  ;;  %v607_v59 = vadd.f32 1.0, %v2679_v8  ;;  %v496_v8 = vmul.f32 1.442695, %v447_v0  ;;  %v730_v0 = vld [vmem:[%s4652_s1 + $0x280] sm:$0xff] }
  0xf1   :  { %v2683_v11 = vpop.eup %2682  ;;  %v504_v13 = vmul.f32 1.442695, %v451_v9  ;;  %2250 = vmatmul.msk.f32.gmra.mxu0 %vm166_vm1, %v45_v7  ;;  %936 = vperm.xlu2 %2649, %v2681_v10   ;;  %v486_v7 = vmul.f32 1.442695, %v442_v58  ;;  %v441_v10 = vsub.f32 0.0, %v2989_v51 }
  0xf2   :  { %v576_v14 = vadd.f32 1.0, %v2683_v11 }
  0xf3   :  { %2686 = vpow2.f32 %v504_v13 }
  0xf4   :  { %2688 = vrcp.f32 %v576_v14  ;;  %v2685_v20 = vpop.eup %2684 }
  0xf5   :  { %2690 = vpow2.f32 %v552_v12  ;;  %v444_v12 = vsub.f32 0.0, %v3013_v60  ;;  %v473_v60 = vsub.f32 0.0, %v2995_v53 }
  0xf6   :  { %v350_v17 = vpop.f32.mrf.mxu0  ;;  %2692 = vrcp.f32 %v607_v59 }
  0xf7   :  { %v452_v19 = vsub.f32 0.0, %v350_v17  ;;  %v484_v17 = vmul.f32 1.442695, %v441_v10  ;;  %v669_v10 = vld [vmem:[%s4652_s1 + $0x98] sm:$0xff] }
  0xf9   :  { %v2687_v21 = vpop.eup %2686  ;;  %v506_v24 = vmul.f32 1.442695, %v452_v19  ;;  %2251 = vmatmul.msk.f32.gmra.mxu0 %vm166_vm1, %v46_v18  ;;  %781 = vperm.xlu2 %2649, %v2685_v20   ;;  %v490_v19 = vmul.f32 1.442695, %v444_v12  ;;  %v667_v12 = vld [vmem:[%s4652_s1 + $0x88] sm:$0xff] }
  0xfa   :  { %v2689_v25 = vpop.eup %2688  ;;  %v577_v26 = vadd.f32 1.0, %v2687_v21 }
  0xfb   :  { %v2691_v50 = vpop.eup %2690  ;;  %2694 = vpow2.f32 %v506_v24  ;;  %786 = vperm.xlu0 %2647, %v2689_v25  }
  0xfc   :  { %2696 = vrcp.f32 %v577_v26  ;;  %v2693_v29 = vpop.eup %2692  ;;  %v601_v30 = vadd.f32 1.0, %v2691_v50  ;;  %v548_v26 = vmul.f32 1.442695, %v473_v60 }
  0xfd   :  { %2698 = vpow2.f32 %v546_v22 }
  0xfe   :  { %v353_v31 = vpop.f32.mrf.mxu0  ;;  %2700 = vpow2.f32 %v550_v27 }
  0xff   :  { %v453_v32 = vsub.f32 0.0, %v353_v31  ;;  %2702 = vrcp.f32 %v601_v30 }
 0x101   :  { %v2695_v33 = vpop.eup %2694  ;;  %v508_v35 = vmul.f32 1.442695, %v453_v32  ;;  %2252 = vmatmul.msk.f32.gmra.mxu0 %vm166_vm1, %v47_v56  ;;  %941 = vperm.xlu2 %2649, %v2693_v29   ;;  %v440_v29 = vsub.f32 0.0, %v2981_v48 }
 0x102   :  { %v2697_v36 = vpop.eup %2696  ;;  %v578_v37 = vadd.f32 1.0, %v2695_v33 }
 0x103   :  { %v2699_v38 = vpop.eup %2698  ;;  %2704 = vpow2.f32 %v508_v35  ;;  %791 = vperm.xlu1 %2648, %v2697_v36   ;;  %v482_v32 = vmul.f32 1.442695, %v440_v29 }
 0x104   :  { %2706 = vrcp.f32 %v578_v37  ;;  %v598_v57 = vadd.f32 1.0, %v2699_v38  ;;  %v2701_v42 = vpop.eup %2700 }
 0x105   :  { %2708 = vpow2.f32 %v488_v34  ;;  %v2703_v44 = vpop.eup %2702  ;;  %v600_v1 = vadd.f32 1.0, %v2701_v42 }
 0x106   :  { %v356_v40 = vpop.f32.mrf.mxu0  ;;  %2710 = vrcp.f32 %v598_v57 }
 0x107   :  { %v454_v43 = vsub.f32 0.0, %v356_v40 }
 0x109   :  { %v2705_v45 = vpop.eup %2704  ;;  %v510_v46 = vmul.f32 1.442695, %v454_v43  ;;  %2253 = vmatmul.msk.f32.gmra.mxu0 %vm166_vm1, %v48_v41  ;;  %911 = vperm.xlu2 %2649, %v2703_v44  }
 0x10a   :  { %v2707_v47 = vpop.eup %2706  ;;  %v579_v52 = vadd.f32 1.0, %v2705_v45  ;;  %v723_v45 = vld [vmem:[%s4652_s1 + $0x248] sm:$0xff] }
 0x10b   :  { %v2709_v55 = vpop.eup %2708  ;;  %2712 = vpow2.f32 %v510_v46  ;;  %796 = vperm.xlu1 %2648, %v2707_v47   ;;  %v725_v46 = vld [vmem:[%s4652_s1 + $0x258] sm:$0xff] }
 0x10c   :  { %2714 = vrcp.f32 %v579_v52  ;;  %v569_v61 = vadd.f32 1.0, %v2709_v55  ;;  %v2711_v3 = vpop.eup %2710 }
 0x10d   :  { %2716 = vpow2.f32 %v492_v49 }
 0x10e   :  { %v359_v62 = vpop.f32.mrf.mxu0  ;;  %2718 = vrcp.f32 %v600_v1 }
 0x10f   :  { %v455_v2 = vsub.f32 0.0, %v359_v62  ;;  %2720 = vrcp.f32 %v569_v61 }
 0x111   :  { %v2713_v4 = vpop.eup %2712  ;;  %v512_v5 = vmul.f32 1.442695, %v455_v2  ;;  %2254 = vmatmul.msk.f32.gmra.mxu0 %vm166_vm1, %v49_v63  ;;  %896 = vperm.xlu2 %2649, %v2711_v3   ;;  %v727_v2 = vld [vmem:[%s4652_s1 + $0x268] sm:$0xff] }
 0x112   :  { %v2715_v6 = vpop.eup %2714  ;;  %v580_v54 = vadd.f32 1.0, %v2713_v4  ;;  %v731_v3 = vld [vmem:[%s4652_s1 + $0x288] sm:$0xff]  ;;  %v732_v4 = vld [vmem:[%s4652_s1 + $0x290] sm:$0xff] }
 0x113   :  { %2722 = vpow2.f32 %v512_v5  ;;  %801 = vperm.xlu1 %2648, %v2715_v6   ;;  %v2717_v9 = vpop.eup %2716  ;;  %v733_v5 = vld [vmem:[%s4652_s1 + $0x298] sm:$0xff]  ;;  %v726_v6 = vld [vmem:[%s4652_s1 + $0x260] sm:$0xff] }
 0x114   :  { %2724 = vrcp.f32 %v580_v54  ;;  %v2719_v11 = vpop.eup %2718  ;;  %v571_v13 = vadd.f32 1.0, %v2717_v9  ;;  %v729_v54 = vld [vmem:[%s4652_s1 + $0x278] sm:$0xff] }
 0x115   :  { %2726 = vpow2.f32 %v486_v7  ;;  %v2721_v14 = vpop.eup %2720 }
 0x116   :  { %v3075_v15 = vpop.f32.mrf.mxu0  ;;  %2728 = vpow2.f32 %v496_v8 }
 0x117   :  { %2730 = vrcp.f32 %v571_v13  ;;  %v728_v13 = vld [vmem:[%s4652_s1 + $0x270] sm:$0xff] }
 0x119   :  { %v2723_v59 = vpop.eup %2722  ;;  %751 = vperm.xlu2 %2649, %v2721_v14  }
 0x11a   :  { %v2725_v16 = vpop.eup %2724  ;;  %v581_v18 = vadd.f32 1.0, %v2723_v59 }
 0x11b   :  { %906 = vperm.xlu1 %2648, %v2719_v11   ;;  %806 = vperm.xlu0 %2647, %v2725_v16   ;;  %v2727_v20 = vpop.eup %2726 }
 0x11c   :  { %2732 = vrcp.f32 %v581_v18  ;;  %v2729_v51 = vpop.eup %2728  ;;  %v568_v22 = vadd.f32 1.0, %v2727_v20  ;;  %v724_v18 = vld [vmem:[%s4652_s1 + $0x250] sm:$0xff] }
 0x11d   :  { %2734 = vpow2.f32 %v484_v17  ;;  %v573_v23 = vadd.f32 1.0, %v2729_v51  ;;  %v2731_v24 = vpop.eup %2730 }
 0x11e   :  { %v3078_v21 = vpop.f32.mrf.mxu0  ;;  %2736 = vpow2.f32 %v490_v19  ;;  %v722_v19 = vld [vmem:[%s4652_s1 + $0x240] sm:$0xff] }
 0x11f   :  { %2738 = vrcp.f32 %v568_v22 }
 0x120   :  { %2740 = vrcp.f32 %v573_v23 }
 0x121   :  { %2742 = vpow2.f32 %v548_v26 }
 0x122   :  { %v2733_v25 = vpop.eup %2732 }
 0x123   :  { %761 = vperm.xlu1 %2648, %v2731_v24   ;;  %811 = vperm.xlu0 %2647, %v2733_v25   ;;  %v2735_v50 = vpop.eup %2734 }
 0x124   :  { %v2737_v27 = vpop.eup %2736  ;;  %v567_v30 = vadd.f32 1.0, %v2735_v50 }
 0x125   :  { %v570_v31 = vadd.f32 1.0, %v2737_v27  ;;  %v2739_v53 = vpop.eup %2738 }
 0x126   :  { %v3081_v28 = vpop.f32.mrf.mxu0  ;;  %v2741_v56 = vpop.eup %2740  ;;  %2744 = vrcp.f32 %v567_v30 }
 0x127   :  { %2746 = vrcp.f32 %v570_v31  ;;  %v2743_v33 = vpop.eup %2742 }
 0x128   :  { %2748 = vpow2.f32 %v482_v32  ;;  %v599_v35 = vadd.f32 1.0, %v2743_v33 }
 0x12a   :  { %2750 = vrcp.f32 %v599_v35 }
 0x12b   :  { %746 = vperm.xlu1 %2648, %v2739_v53   ;;  %771 = vperm.xlu0 %2647, %v2741_v56  }
 0x12c   :  { %v2745_v36 = vpop.eup %2744 }
 0x12d   :  { %v2747_v37 = vpop.eup %2746 }
 0x12e   :  { %v3084_v34 = vpop.f32.mrf.mxu0  ;;  %v2749_v48 = vpop.eup %2748 }
 0x12f   :  { %v566_v57 = vadd.f32 1.0, %v2749_v48 }
 0x130   :  { %v2751_v40 = vpop.eup %2750 }
 0x131   :  { %2752 = vrcp.f32 %v566_v57 }
 0x133   :  { %741 = vperm.xlu1 %2648, %v2745_v36   ;;  %756 = vperm.xlu0 %2647, %v2747_v37  }
 0x135   :  { %v3088_v39 = vpop.permute.xlu2 %766 }
 0x136   :  { %v3086_v38 = vpop.f32.mrf.mxu0 }
 0x137   :  { %v2753_v43 = vpop.eup %2752 }
 0x13b   :  { %901 = vperm.xlu0 %2647, %v2751_v40  }
 0x13d   :  { %v927_v42 = vpop.permute.xlu2 %926 }
 0x13e   :  { %v3090_v41 = vpop.f32.mrf.mxu0  ;;  %v3133_v8 = vmul.f32 %v927_v42, %v727_v2  ;;  %v1020_v17 = vmul.f32 %v927_v42, %v726_v6 }
 0x13f   :  { %v461_v2 = vsub.f32 0.0, %v3090_v41  ;;  %v456_v41 = vsub.f32 0.0, %v3075_v15  ;;  %v718_v15 = vld [vmem:[%s4652_s1 + $0x220] sm:$0xff] }
 0x141   :  { %v524_v6 = vmul.f32 1.442695, %v461_v2 }
 0x143   :  { %736 = vperm.xlu0 %2647, %v2753_v43   ;;  %v917_v47 = vpop.permute.xlu0 %916 }
 0x144   :  { %v3100_v52 = vmul.f32 %v917_v47, %v723_v45  ;;  %v1016_v29 = vmul.f32 %v917_v47, %v722_v19 }
 0x146   :  { %v3092_v44 = vpop.f32.mrf.mxu0 }
 0x147   :  { %v462_v40 = vsub.f32 0.0, %v3092_v44 }
 0x149   :  { %v526_v47 = vmul.f32 1.442695, %v462_v40 }
 0x14b   :  { %v937_v49 = vpop.permute.xlu2 %936  ;;  %v922_v55 = vpop.permute.xlu1 %921 }
 0x14c   :  { %v3102_v1 = vmul.f32 %v922_v55, %v725_v46  ;;  %v1024_v7 = vmul.f32 %v937_v49, %v730_v0  ;;  %v3135_v9 = vmul.f32 %v937_v49, %v731_v3  ;;  %v1018_v27 = vmul.f32 %v922_v55, %v724_v18 }
 0x14e   :  { %v3104_v58 = vpop.f32.mrf.mxu0  ;;  %v1065_v61 = vpack.c.bf16 %v3102_v1, %v3100_v52  ;;  %v3178_v53 = vpack.c.bf16 %v1018_v27, %v1016_v29  ;;  %v514_v29 = vmul.f32 1.442695, %v456_v41  ;;  %v651_v52 = vld [vmem:[%s4652_s1 + $0x8] sm:$0xff]  ;;  %v2279_v1 = vld [vmem:[%s4653_s3 + $0x18] sm:$0xf] }
 0x153   :  { %v3108_v62 = vpop.permute.xlu2 %781 }
 0x154   :  { %v3159_v60 = vmul.f32 %v3108_v62, %v669_v10 }
 0x156   :  { %v3110_v63 = vpop.f32.mrf.mxu0 }
 0x157   :  { %v464_v18 = vsub.f32 0.0, %v3110_v63 }
 0x159   :  { %v530_v63 = vmul.f32 1.442695, %v464_v18  ;;  %v674_v18 = vld [vmem:[%s4652_s1 + $0xc0] sm:$0xff] }
 0x15b   :  { %v942_v11 = vpop.permute.xlu2 %941  ;;  %v932_v14 = vpop.permute.xlu0 %931 }
 0x15c   :  { %v1026_v59 = vmul.f32 %v942_v11, %v732_v4  ;;  %v3146_v16 = vmul.f32 %v942_v11, %v733_v5  ;;  %v3156_v51 = vmul.f32 %v932_v14, %v729_v54  ;;  %v1022_v24 = vmul.f32 %v932_v14, %v728_v13 }
 0x15d   :  { %v3154_v20 = vpop.permute.xlu1 %776 }
 0x15e   :  { %v3162_v22 = vmul.f32 %v3154_v20, %v667_v12  ;;  %v3164_v23 = vpop.f32.mrf.mxu0  ;;  %v3166_v25 = vpack.c.bf16 %v1026_v59, %v1024_v7  ;;  %v1069_v26 = vpack.c.bf16 %v3146_v16, %v3135_v9  ;;  %v1067_v50 = vpack.c.bf16 %v3156_v51, %v3133_v8  ;;  %v659_v9 = vld [vmem:[%s4652_s1 + $0x48] sm:$0xff]  ;;  %v2347_v16 = vld [vmem:[%s4653_s3 + $0x98] sm:$0xf] }
 0x15f   :  { %v3175_v31 = vpack.c.bf16 %v1022_v24, %v1020_v17  ;;  %v655_v8 = vld [vmem:[%s4652_s1 + $0x28] sm:$0xff]  ;;  %v717_v51 = vld [vmem:[%s4652_s1 + $0x218] sm:$0xff] }
 0x160   :  { %2641 = vmatpush.bf16.msra.mxu3 %v3166_v25  ;;  %v1037_v30 = vpack.c.bf16 %v3159_v60, %v3162_v22 }
 0x164   :  { %2642 = vmatpush.bf16.msra.mxu3 %v3175_v31 }
 0x166   :  { %v392_v56 = vpop.f32.mrf.mxu0 }
 0x167   :  { %v466_v32 = vsub.f32 0.0, %v392_v56 }
 0x168   :  { %2643 = vmatpush.bf16.msra.mxu3 %v3178_v53 }
 0x169   :  { %v534_v33 = vmul.f32 1.442695, %v466_v32 }
 0x16b   :  { %2754 = vpow2.f32 %v534_v33  ;;  %v720_v33 = vld [vmem:[%s4652_s1 + $0x230] sm:$0xff] }
 0x16d   :  { %v3187_v12 = vpop.permute.xlu0 %786 }
 0x16e   :  { %v395_v35 = vpop.f32.mrf.mxu0 }
 0x16f   :  { %v467_v36 = vsub.f32 0.0, %v395_v35  ;;  %v3196_v35 = vpop.permute.xlu2 %911 }
 0x171   :  { %v2755_v37 = vpop.eup %2754  ;;  %v536_v48 = vmul.f32 1.442695, %v467_v36 }
 0x172   :  { %v592_v57 = vadd.f32 1.0, %v2755_v37 }
 0x173   :  { %2756 = vpow2.f32 %v536_v48 }
 0x174   :  { %2758 = vrcp.f32 %v592_v57  ;;  %v1014_v57 = vmul.f32 %v3196_v35, %v720_v33  ;;  %v672_v33 = vld [vmem:[%s4652_s1 + $0xb0] sm:$0xff] }
 0x175   :  { %v3182_v42 = vpop.permute.xlu1 %791 }
 0x176   :  { %v398_v43 = vpop.f32.mrf.mxu0 }
 0x177   :  { %v468_v45 = vsub.f32 0.0, %v398_v43 }
 0x179   :  { %v2757_v46 = vpop.eup %2756  ;;  %v538_v49 = vmul.f32 1.442695, %v468_v45  ;;  %v463_v45 = vsub.f32 0.0, %v3104_v58  ;;  %v680_v58 = vld [vmem:[%s4652_s1 + $0xf0] sm:$0xff] }
 0x17a   :  { %v2759_v55 = vpop.eup %2758  ;;  %v593_v0 = vadd.f32 1.0, %v2757_v46 }
 0x17b   :  { %2760 = vpow2.f32 %v538_v49  ;;  %866 = vperm.xlu0 %2647, %v2759_v55   ;;  %v465_v49 = vsub.f32 0.0, %v3164_v23 }
 0x17c   :  { %2762 = vrcp.f32 %v593_v0 }
 0x17d   :  { %2764 = vpow2.f32 %v526_v47  ;;  %v3185_v3 = vpop.permute.xlu1 %796 }
 0x17e   :  { %v401_v4 = vpop.f32.mrf.mxu0 }
 0x17f   :  { %v469_v5 = vsub.f32 0.0, %v401_v4 }
 0x181   :  { %v2761_v44 = vpop.eup %2760  ;;  %v540_v7 = vmul.f32 1.442695, %v469_v5 }
 0x182   :  { %v2763_v54 = vpop.eup %2762  ;;  %v594_v10 = vadd.f32 1.0, %v2761_v44  ;;  %v528_v44 = vmul.f32 1.442695, %v463_v45 }
 0x183   :  { %v2765_v11 = vpop.eup %2764  ;;  %2766 = vpow2.f32 %v540_v7  ;;  %871 = vperm.xlu1 %2648, %v2763_v54   ;;  %v532_v7 = vmul.f32 1.442695, %v465_v49  ;;  %v676_v54 = vld [vmem:[%s4652_s1 + $0xd0] sm:$0xff] }
 0x184   :  { %2768 = vrcp.f32 %v594_v10  ;;  %v588_v14 = vadd.f32 1.0, %v2765_v11 }
 0x185   :  { %2770 = vpow2.f32 %v524_v6  ;;  %v3189_v13 = vpop.permute.xlu1 %801  ;;  %v678_v6 = vld [vmem:[%s4652_s1 + $0xe0] sm:$0xff] }
 0x186   :  { %v404_v59 = vpop.f32.mrf.mxu0  ;;  %2772 = vrcp.f32 %v588_v14 }
 0x187   :  { %v470_v17 = vsub.f32 0.0, %v404_v59 }
 0x189   :  { %v2767_v19 = vpop.eup %2766  ;;  %v542_v24 = vmul.f32 1.442695, %v470_v17  ;;  %v458_v17 = vsub.f32 0.0, %v3081_v28  ;;  %v968_v28 = vmul.f32 %v3185_v3, %v674_v18 }
 0x18a   :  { %v2769_v27 = vpop.eup %2768  ;;  %v595_v56 = vadd.f32 1.0, %v2767_v19 }
 0x18b   :  { %v2771_v32 = vpop.eup %2770  ;;  %2774 = vpow2.f32 %v542_v24  ;;  %876 = vperm.xlu1 %2648, %v2769_v27   ;;  %v460_v24 = vsub.f32 0.0, %v3086_v38  ;;  %v970_v27 = vmul.f32 %v3189_v13, %v676_v54  ;;  %v670_v38 = vld [vmem:[%s4652_s1 + $0xa0] sm:$0xff] }
 0x18c   :  { %2776 = vrcp.f32 %v595_v56  ;;  %v587_v48 = vadd.f32 1.0, %v2771_v32  ;;  %v2773_v47 = vpop.eup %2772 }
 0x18d   :  { %v3201_v36 = vpop.permute.xlu1 %906  ;;  %v3203_v37 = vpop.permute.xlu0 %806  ;;  %2778 = vpow2.f32 %v514_v29 }
 0x18e   :  { %v1012_v40 = vmul.f32 %v3201_v36, %v718_v15  ;;  %v407_v43 = vpop.f32.mrf.mxu0  ;;  %2780 = vpow2.f32 %v530_v63  ;;  %v972_v41 = vmul.f32 %v3203_v37, %v678_v6 }
 0x18f   :  { %v471_v46 = vsub.f32 0.0, %v407_v43  ;;  %2782 = vrcp.f32 %v587_v48  ;;  %v518_v48 = vmul.f32 1.442695, %v458_v17  ;;  %v1040_v43 = vpack.c.bf16 %v970_v27, %v968_v28  ;;  %v662_v17 = vld [vmem:[%s4652_s1 + $0x60] sm:$0xff] }
 0x190   :  { %v3209_v55 = vpack.c.bf16 %v1014_v57, %v1012_v40  ;;  %v522_v57 = vmul.f32 1.442695, %v460_v24  ;;  %v966_v40 = vmul.f32 %v3182_v42, %v672_v33 }
 0x191   :  { %v2775_v0 = vpop.eup %2774  ;;  %v544_v2 = vmul.f32 1.442695, %v471_v46  ;;  %v666_v46 = vld [vmem:[%s4652_s1 + $0x80] sm:$0xff] }
 0x192   :  { %v2777_v4 = vpop.eup %2776  ;;  %v596_v5 = vadd.f32 1.0, %v2775_v0  ;;  %2644 = vmatpush.bf16.msra.mxu3 %v3209_v55  ;;  %v964_v0 = vmul.f32 %v3187_v12, %v670_v38 }
 0x193   :  { %2784 = vpow2.f32 %v544_v2  ;;  %846 = vperm.xlu1 %2648, %v2773_v47   ;;  %881 = vperm.xlu2 %2649, %v2777_v4   ;;  %v2779_v23 = vpop.eup %2778  ;;  %v457_v2 = vsub.f32 0.0, %v3078_v21  ;;  %v459_v4 = vsub.f32 0.0, %v3084_v34  ;;  %v664_v21 = vld [vmem:[%s4652_s1 + $0x70] sm:$0xff] }
 0x194   :  { %2786 = vrcp.f32 %v596_v5  ;;  %v2781_v11 = vpop.eup %2780  ;;  %v582_v59 = vadd.f32 1.0, %v2779_v23  ;;  %v668_v5 = vld [vmem:[%s4652_s1 + $0x90] sm:$0xff]  ;;  %v1038_v23 = vpack.c.bf16 %v966_v40, %v964_v0 }
 0x195   :  { %v3221_v10 = vpop.permute.xlu0 %811  ;;  %2788 = vpow2.f32 %v528_v44  ;;  %v2783_v19 = vpop.eup %2782  ;;  %v590_v32 = vadd.f32 1.0, %v2781_v11 }
 0x196   :  { %v974_v14 = vmul.f32 %v3221_v10, %v680_v58  ;;  %2790 = vpow2.f32 %v532_v7  ;;  %v3250_v44 = vpop.permute.xlu1 %761  ;;  %v960_v58 = vmul.f32 %v3154_v20, %v666_v46  ;;  %v3253_v11 = vpop.permute.xlu2 %896  ;;  %v520_v20 = vmul.f32 1.442695, %v459_v4  ;;  %v714_v46 = vld [vmem:[%s4652_s1 + $0x200] sm:$0xff]  ;;  %v679_v4 = vld [vmem:[%s4652_s1 + $0xe8] sm:$0xff] }
 0x197   :  { %2792 = vrcp.f32 %v582_v59  ;;  %v516_v59 = vmul.f32 1.442695, %v457_v2  ;;  %v716_v2 = vld [vmem:[%s4652_s1 + $0x210] sm:$0xff] }
 0x198   :  { %v1042_v29 = vpack.c.bf16 %v974_v14, %v972_v41  ;;  %v962_v41 = vmul.f32 %v3108_v62, %v668_v5  ;;  %v658_v62 = vld [vmem:[%s4652_s1 + $0x40] sm:$0xff] }
 0x199   :  { %v2785_v56 = vpop.eup %2784 }
 0x19a   :  { %v2787_v15 = vpop.eup %2786  ;;  %v597_v63 = vadd.f32 1.0, %v2785_v56  ;;  %1449 = vmatpush.bf16.msra.mxu1 %v1042_v29  ;;  %2633 = vmatpush.bf16.msrb.mxu2 %v1042_v29  ;;  %v956_v56 = vmul.f32 %v3088_v39, %v662_v17  ;;  %v973_v17 = vmul.f32 %v3203_v37, %v679_v4  ;;  %v673_v37 = vld [vmem:[%s4652_s1 + $0xb8] sm:$0xff]  ;;  %v2560_v4 = vld [vmem:[%s4653_s3 + $0x8] sm:$0xf0] }
 0x19b   :  { %841 = vperm.xlu1 %2648, %v2783_v19   ;;  %886 = vperm.xlu2 %2649, %v2787_v15   ;;  %v2789_v45 = vpop.eup %2788  ;;  %v1036_v19 = vpack.c.bf16 %v962_v41, %v960_v58  ;;  %v677_v41 = vld [vmem:[%s4652_s1 + $0xd8] sm:$0xff] }
 0x19c   :  { %2794 = vrcp.f32 %v597_v63  ;;  %v2791_v49 = vpop.eup %2790  ;;  %v589_v6 = vadd.f32 1.0, %v2789_v45 }
 0x19d   :  { %2796 = vrcp.f32 %v590_v32  ;;  %v3242_v47 = vpop.permute.xlu0 %771  ;;  %v2793_v7 = vpop.eup %2792  ;;  %v591_v54 = vadd.f32 1.0, %v2791_v49  ;;  %v660_v32 = vld [vmem:[%s4652_s1 + $0x50] sm:$0xff] }
 0x19e   :  { %1450 = vmatpush.bf16.msra.mxu1 %v1040_v43  ;;  %2798 = vpow2.f32 %v518_v48  ;;  %2634 = vmatpush.bf16.msrb.mxu2 %v1040_v43  ;;  %v958_v18 = vmul.f32 %v3242_v47, %v664_v21  ;;  %v654_v48 = vld [vmem:[%s4652_s1 + $0x20] sm:$0xff]  ;;  %v3276_v38 = vpop.permute.xlu1 %746  ;;  %v954_v40 = vmul.f32 %v3250_v44, %v660_v32  ;;  %v681_v43 = vld [vmem:[%s4652_s1 + $0xf8] sm:$0xff]  ;;  %v656_v49 = vld [vmem:[%s4652_s1 + $0x30] sm:$0xff]  ;;  %v3288_v0 = vpop.permute.xlu2 %751  ;;  %v1008_v21 = vmul.f32 %v3253_v11, %v714_v46 }
 0x19f   :  { %2800 = vpow2.f32 %v522_v57  ;;  %v948_v5 = vmul.f32 %v3276_v38, %v654_v48  ;;  %v650_v48 = vld [vmem:[%s4652_s1] sm:$0xff] }
 0x1a0   :  { %2802 = vrcp.f32 %v589_v6  ;;  %v1034_v28 = vpack.c.bf16 %v958_v18, %v956_v56  ;;  %v675_v18 = vld [vmem:[%s4652_s1 + $0xc8] sm:$0xff] }
 0x1a1   :  { %2804 = vrcp.f32 %v591_v54 }
 0x1a2   :  { %v2795_v34 = vpop.eup %2794  ;;  %1451 = vmatpush.bf16.msra.mxu1 %v1038_v23  ;;  %2635 = vmatpush.bf16.msrb.mxu2 %v1038_v23  ;;  %2806 = vpow2.f32 %v516_v59  ;;  %v975_v23 = vmul.f32 %v3221_v10, %v681_v43  ;;  %v2335_v59 = vld [vmem:[%s4653_s3 + $0x80] sm:$0xf]  ;;  %v2576_v10 = vld [vmem:[%s4653_s3 + $0x88] sm:$0xf0] }
 0x1a3   :  { %v2797_v14 = vpop.eup %2796  ;;  %816 = vperm.xlu1 %2648, %v2793_v7   ;;  %891 = vperm.xlu0 %2647, %v2795_v34   ;;  %2808 = vpow2.f32 %v520_v20  ;;  %v950_v34 = vmul.f32 %v3288_v0, %v656_v49  ;;  %v3319_v32 = vor.u32 %v2576_v10, %v2335_v59 }
 0x1a4   :  { %856 = vperm.xlu2 %2649, %v2797_v14   ;;  %v2799_v24 = vpop.eup %2798  ;;  %v1043_v56 = vpack.c.bf16 %v975_v23, %v973_v17  ;;  %v661_v17 = vld [vmem:[%s4652_s1 + $0x58] sm:$0xff] }
 0x1a5   :  { %v3266_v27 = vpop.permute.xlu0 %756  ;;  %v2801_v29 = vpop.eup %2800  ;;  %v584_v33 = vadd.f32 1.0, %v2799_v24  ;;  %v955_v22 = vmul.f32 %v3250_v44, %v661_v17  ;;  %v2591_v17 = vld [vmem:[%s4653_s3 + $0x100] sm:$0xf0] }
 0x1a6   :  { %1452 = vmatpush.bf16.msra.mxu1 %v1036_v19  ;;  %2636 = vmatpush.bf16.msrb.mxu2 %v1036_v19  ;;  %v952_v15 = vmul.f32 %v3266_v27, %v658_v62  ;;  %v586_v63 = vadd.f32 1.0, %v2801_v29  ;;  %v2803_v57 = vpop.eup %2802  ;;  %v1030_v19 = vpack.c.bf16 %v950_v34, %v948_v5  ;;  %v971_v29 = vmul.f32 %v3189_v13, %v677_v41  ;;  %v3329_v13 = vpop.permute.xlu1 %741  ;;  %v665_v34 = vld [vmem:[%s4652_s1 + $0x78] sm:$0xff] }
 0x1a7   :  { %v2805_v45 = vpop.eup %2804  ;;  %2810 = vrcp.f32 %v584_v33  ;;  %v959_v59 = vmul.f32 %v3242_v47, %v665_v34  ;;  %v721_v47 = vld [vmem:[%s4652_s1 + $0x238] sm:$0xff]  ;;  %v2588_v34 = vld [vmem:[%s4653_s3 + $0xe8] sm:$0xf0] }
 0x1a8   :  { %v1032_v6 = vpack.c.bf16 %v954_v40, %v952_v15  ;;  %v2807_v58 = vpop.eup %2806  ;;  %2812 = vrcp.f32 %v586_v63  ;;  %v652_v63 = vld [vmem:[%s4652_s1 + $0x10] sm:$0xff]  ;;  %v1015_v60 = vmul.f32 %v3196_v35, %v721_v47  ;;  %v2395_v47 = vld [vmem:[%s4653_s3 + $0xf8] sm:$0xf] }
 0x1a9   :  { %v2809_v54 = vpop.eup %2808  ;;  %v583_v20 = vadd.f32 1.0, %v2807_v58  ;;  %v946_v46 = vmul.f32 %v3329_v13, %v652_v63 }
 0x1aa   :  { %1453 = vmatpush.bf16.msra.mxu1 %v1034_v28  ;;  %2637 = vmatpush.bf16.msrb.mxu2 %v1034_v28  ;;  %v585_v62 = vadd.f32 1.0, %v2809_v54  ;;  %v969_v28 = vmul.f32 %v3185_v3, %v675_v18  ;;  %v967_v3 = vmul.f32 %v3182_v42, %v673_v37  ;;  %v2608_v42 = vld [vmem:[%s4653_s3 + $0x188] sm:$0xf0] }
 0x1ab   :  { %861 = vperm.xlu0 %2647, %v2805_v45   ;;  %2814 = vrcp.f32 %v583_v20  ;;  %v2267_v45 = vld [vmem:[%s4653_s3] sm:$0xf] }
 0x1ac   :  { %851 = vperm.xlu2 %2649, %v2803_v57   ;;  %v671_v57 = vld [vmem:[%s4652_s1 + $0xa8] sm:$0xff]  ;;  %2816 = vrcp.f32 %v585_v62  ;;  %v1041_v43 = vpack.c.bf16 %v971_v29, %v969_v28  ;;  %v3356_v54 = vor.u32 %v2560_v4, %v2267_v45  ;;  %v2483_v4 = vld [vmem:[%s4653_s3 + $0x1b0] sm:$0xf] }
 0x1ad   :  { %v3298_v7 = vpop.permute.xlu0 %901  ;;  %v2811_v33 = vpop.eup %2810  ;;  %v965_v5 = vmul.f32 %v3187_v12, %v671_v57  ;;  %v663_v12 = vld [vmem:[%s4652_s1 + $0x68] sm:$0xff]  ;;  %v2471_v57 = vld [vmem:[%s4653_s3 + $0x198] sm:$0xf] }
 0x1ae   :  { %v1010_v14 = vmul.f32 %v3298_v7, %v716_v2  ;;  %1454 = vmatpush.bf16.msra.mxu1 %v1032_v6  ;;  %2638 = vmatpush.bf16.msrb.mxu2 %v1032_v6  ;;  %v2813_v15 = vpop.eup %2812  ;;  %v2459_v2 = vld [vmem:[%s4653_s3 + $0x180] sm:$0xf]  ;;  %v957_v10 = vmul.f32 %v3088_v39, %v663_v12  ;;  %v953_v39 = vmul.f32 %v3266_v27, %v659_v9  ;;  %v2371_v45 = vld [vmem:[%s4653_s3 + $0xc8] sm:$0xf]  ;;  %v2617_v9 = vld [vmem:[%s4653_s3 + $0x1d0] sm:$0xf0] }
 0x1af   :  { %v1039_v58 = vpack.c.bf16 %v967_v3, %v965_v5  ;;  %v3354_v23 = vor.u32 %v2608_v42, %v2459_v2  ;;  %v1011_v27 = vmul.f32 %v3298_v7, %v717_v51  ;;  %v653_v7 = vld [vmem:[%s4652_s1 + $0x18] sm:$0xff]  ;;  %v2611_v3 = vld [vmem:[%s4653_s3 + $0x1a0] sm:$0xf0]  ;;  %v2303_v2 = vld [vmem:[%s4653_s3 + $0x48] sm:$0xf] }
 0x1b0   :  { %v3316_v24 = vpack.c.bf16 %v1010_v14, %v1008_v21  ;;  %v719_v14 = vld [vmem:[%s4652_s1 + $0x228] sm:$0xff]  ;;  %v1035_v18 = vpack.c.bf16 %v959_v59, %v957_v10  ;;  %v1033_v35 = vpack.c.bf16 %v955_v22, %v953_v39  ;;  %v2569_v42 = vld [vmem:[%s4653_s3 + $0x50] sm:$0xf0]  ;;  %v2614_v5 = vld [vmem:[%s4653_s3 + $0x1b8] sm:$0xf0] }
 0x1b1   :  { %4673 = vst [vmem:[#allocation2_spill] sm:$0xff] %v3354_v23  ;;  %v2815_v21 = vpop.eup %2814  ;;  %v1013_v20 = vmul.f32 %v3201_v36, %v719_v14  ;;  %v949_v36 = vmul.f32 %v3276_v38, %v655_v8  ;;  %v2315_v12 = vld [vmem:[%s4653_s3 + $0x60] sm:$0xf]  ;;  %v2572_v14 = vld [vmem:[%s4653_s3 + $0x68] sm:$0xf0] }
 0x1b2   :  { %1455 = vmatpush.bf16.msra.mxu1 %v1030_v19  ;;  %2645 = vmatpush.bf16.msra.mxu3 %v3316_v24  ;;  %v2817_v41 = vpop.eup %2816  ;;  %v2495_v59 = vld [vmem:[%s4653_s3 + $0x1c8] sm:$0xf]  ;;  %v2327_v8 = vld [vmem:[%s4653_s3 + $0x78] sm:$0xf]  ;;  %v2575_v51 = vld [vmem:[%s4653_s3 + $0x80] sm:$0xf0] }
 0x1b3   :  { %2639 = vmatpush.bf16.msrb.mxu2 %v1030_v19  ;;  %836 = vperm.xlu0 %2647, %v2813_v15   ;;  %v1063_v62 = vpack.c.bf16 %v1015_v60, %v1013_v20  ;;  %v947_v15 = vmul.f32 %v3329_v13, %v653_v7  ;;  %v2291_v13 = vld [vmem:[%s4653_s3 + $0x30] sm:$0xf]  ;;  %v3528_v20 = vor.u32 %v2591_v17, %v2395_v47  ;;  %v2507_v60 = vld [vmem:[%s4653_s3 + $0x1e0] sm:$0xf]  ;;  %v2620_v22 = vld [vmem:[%s4653_s3 + $0x1e8] sm:$0xf0] }
 0x1b4   :  { %826 = vperm.xlu2 %2649, %v2811_v33   ;;  %v713_v7 = vld [vmem:[%s4652_s1 + $0x1f8] sm:$0xff]  ;;  %v703_v47 = vld [vmem:[%s4652_s1 + $0x1a8] sm:$0xff] }
 0x1b5   :  { %v737_v40 = vpop.permute.xlu0 %736  ;;  %2522 = vmatmul.msk.bf16.vlgmr.msra.gmra.mxu3 %vm1385_vm2, %v3319_v32 }
 0x1b6   :  { %1791 = vmatpush.bf16.msrb.mxu3 %v1043_v56  ;;  %v944_v49 = vmul.f32 %v737_v40, %v650_v48  ;;  %v945_v29 = vmul.f32 %v737_v40, %v651_v52  ;;  %v2566_v48 = vld [vmem:[%s4653_s3 + $0x38] sm:$0xf0]  ;;  %v3460_v40 = vor.u32 %v2611_v3, %v2471_v57  ;;  %v708_v57 = vld [vmem:[%s4652_s1 + $0x1d0] sm:$0xff] }
 0x1b7   :  { %v709_v3 = vld [vmem:[%s4652_s1 + $0x1d8] sm:$0xff] }
 0x1b8   :  { %v1028_v6 = vpack.c.bf16 %v946_v46, %v944_v49  ;;  %v1029_v28 = vpack.c.bf16 %v947_v15, %v945_v29  ;;  %4674 = vst [vmem:[#allocation3_spill] sm:$0xff] %v3460_v40  ;;  %v2585_v46 = vld [vmem:[%s4653_s3 + $0xd0] sm:$0xf0]  ;;  %v2339_v29 = vld [vmem:[%s4653_s3 + $0x90] sm:$0xf]  ;;  %v707_v15 = vld [vmem:[%s4652_s1 + $0x1c8] sm:$0xff] }
 0x1b9   :  { %v3472_v49 = vor.u32 %v2585_v46, %v2371_v45  ;;  %v704_v46 = vld [vmem:[%s4652_s1 + $0x1b0] sm:$0xff] }
 0x1ba   :  { %1792 = vmatpush.bf16.msrb.mxu3 %v1041_v43  ;;  %1456 = vmatpush.bf16.msra.mxu1 %v1028_v6  ;;  %v3462_v43 = vor.u32 %v2566_v48, %v2291_v13 }
 0x1bb   :  { %2640 = vmatpush.bf16.msrb.mxu2 %v1028_v6  ;;  %831 = vperm.xlu0 %2647, %v2817_v41   ;;  %v3488_v6 = vor.u32 %v2614_v5, %v2483_v4 }
 0x1bc   :  { %821 = vperm.xlu2 %2649, %v2815_v21   ;;  %v2383_v21 = vld [vmem:[%s4653_s3 + $0xe0] sm:$0xf] }
 0x1bd   :  { %1457 = vmatmul.bf16.vlgmr.msra.gmra.mxu1 %v3356_v54  ;;  %4675 = vst [vmem:[#allocation4_spill] sm:$0xff] %v3488_v6  ;;  %v3500_v41 = vor.u32 %v2588_v34, %v2383_v21  ;;  %v705_v34 = vld [vmem:[%s4652_s1 + $0x1b8] sm:$0xff] }
 0x1be   :  { %1793 = vmatpush.bf16.msrb.mxu3 %v1039_v58  ;;  %2022 = vmatpush.bf16.msrb.mxu1 %v1069_v26  ;;  %v2579_v26 = vld [vmem:[%s4653_s3 + $0xa0] sm:$0xf0]  ;;  %v3490_v58 = vor.u32 %v2569_v42, %v2303_v2 }
 0x1bf   :  { %1537 = vmatmul.bf16.vlgmr.msrb.gmra.mxu2 %v3354_v23  ;;  %v3397_v19 = vor.u32 %v2579_v26, %v2347_v16  ;;  %v3516_v16 = vor.u32 %v2617_v9, %v2495_v59  ;;  %v3518_v26 = vor.u32 %v2572_v14, %v2315_v12  ;;  %v702_v14 = vld [vmem:[%s4652_s1 + $0x1a0] sm:$0xff] }
 0x1c1   :  { %4676 = vst [vmem:[#allocation5_spill] sm:$0xff] %v3516_v16 }
 0x1c2   :  { %1794 = vmatpush.bf16.msrb.mxu3 %v1037_v30  ;;  %2023 = vmatpush.bf16.msrb.mxu1 %v1067_v50  ;;  %v715_v50 = vld [vmem:[%s4652_s1 + $0x208] sm:$0xff]  ;;  %v657_v30 = vld [vmem:[%s4652_s1 + $0x38] sm:$0xff] }
 0x1c3   :  { %v1009_v44 = vmul.f32 %v3253_v11, %v715_v50  ;;  %v951_v38 = vmul.f32 %v3288_v0, %v657_v30  ;;  %v2359_v11 = vld [vmem:[%s4653_s3 + $0xb0] sm:$0xf]  ;;  %v2582_v0 = vld [vmem:[%s4653_s3 + $0xb8] sm:$0xf0]  ;;  %v3544_v50 = vor.u32 %v2620_v22, %v2507_v60  ;;  %v3546_v30 = vor.u32 %v2575_v51, %v2327_v8 }
 0x1c4   :  { %v3444_v63 = vor.u32 %v2582_v0, %v2359_v11  ;;  %v700_v51 = vld [vmem:[%s4652_s1 + $0x190] sm:$0xff] }
 0x1c5   :  { %2523 = vmatmul.msk.bf16.gmra.mxu3 %vm1385_vm2, %v3397_v19  ;;  %v1031_v56 = vpack.c.bf16 %v951_v38, %v949_v36  ;;  %v1061_v33 = vpack.c.bf16 %v1011_v27, %v1009_v44  ;;  %4677 = vst [vmem:[#allocation6_spill] sm:$0xff] %v3544_v50  ;;  %v2407_v27 = vld [vmem:[%s4653_s3 + $0x110] sm:$0xf]  ;;  %v711_v44 = vld [vmem:[%s4652_s1 + $0x1e8] sm:$0xff] }
 0x1c6   :  { %1795 = vmatpush.bf16.msrb.mxu3 %v1035_v18  ;;  %2024 = vmatpush.bf16.msrb.mxu1 %v1065_v61  ;;  %v2563_v61 = vld [vmem:[%s4653_s3 + $0x20] sm:$0xf0]  ;;  %v712_v38 = vld [vmem:[%s4652_s1 + $0x1f0] sm:$0xff] }
 0x1c7   :  { %v3434_v37 = vor.u32 %v2563_v61, %v2279_v1  ;;  %v710_v61 = vld [vmem:[%s4652_s1 + $0x1e0] sm:$0xff] }
 0x1ca   :  { %1796 = vmatpush.bf16.msrb.mxu3 %v1033_v35  ;;  %2025 = vmatpush.bf16.msrb.mxu1 %v1063_v62  ;;  %v2594_v35 = vld [vmem:[%s4653_s3 + $0x118] sm:$0xf0] }
 0x1cb   :  { %v3556_v1 = vor.u32 %v2594_v35, %v2407_v27  ;;  %v2419_v35 = vld [vmem:[%s4653_s3 + $0x128] sm:$0xf] }
 0x1cd   :  { %1462 = vmatmul.bf16.gmra.mxu1 %v3434_v37 }
 0x1ce   :  { %1797 = vmatpush.bf16.msrb.mxu3 %v1031_v56  ;;  %2026 = vmatpush.bf16.msrb.mxu1 %v1061_v33  ;;  %v2578_v56 = vld [vmem:[%s4653_s3 + $0x98] sm:$0xf0]  ;;  %v706_v33 = vld [vmem:[%s4652_s1 + $0x1c0] sm:$0xff] }
 0x1cf   :  { %1542 = vmatmul.bf16.gmra.mxu2 %v3460_v40  ;;  %v3590_v45 = vor.u32 %v2578_v56, %v2339_v29  ;;  %v696_v29 = vld [vmem:[%s4652_s1 + $0x170] sm:$0xff] }
 0x1d2   :  { %1798 = vmatpush.bf16.msrb.mxu3 %v1029_v28 }
 0x1d5   :  { %2524 = vmatmul.msk.bf16.gmra.mxu3 %vm1385_vm2, %v3444_v63 }
 0x1dd   :  { %1467 = vmatmul.bf16.gmra.mxu1 %v3462_v43 }
 0x1df   :  { %1547 = vmatmul.bf16.gmra.mxu2 %v3488_v6 }
 0x1e5   :  { %2525 = vmatmul.msk.bf16.gmra.mxu3 %vm1385_vm2, %v3472_v49 }
 0x1ed   :  { %1472 = vmatmul.bf16.gmra.mxu1 %v3490_v58  ;;  %v882_v10 = vpop.permute.xlu2 %881  ;;  %v867_v36 = vpop.permute.xlu0 %866 }
 0x1ee   :  { %v1002_v59 = vmul.f32 %v882_v10, %v708_v57  ;;  %v1003_v9 = vmul.f32 %v882_v10, %v709_v3  ;;  %v996_v22 = vmul.f32 %v867_v36, %v702_v14  ;;  %v701_v10 = vld [vmem:[%s4652_s1 + $0x198] sm:$0xff] }
 0x1ef   :  { %1552 = vmatmul.bf16.gmra.mxu2 %v3516_v16 }
 0x1f5   :  { %2526 = vmatmul.msk.bf16.gmra.mxu3 %vm1385_vm2, %v3500_v41  ;;  %v872_v39 = vpop.permute.xlu1 %871  ;;  %v887_v18 = vpop.permute.xlu2 %886 }
 0x1f6   :  { %v1004_v11 = vmul.f32 %v887_v18, %v710_v61  ;;  %v1005_v0 = vmul.f32 %v887_v18, %v711_v44  ;;  %v998_v17 = vmul.f32 %v872_v39, %v704_v46  ;;  %v999_v18 = vmul.f32 %v872_v39, %v705_v34  ;;  %v2597_v39 = vld [vmem:[%s4653_s3 + $0x130] sm:$0xf0]  ;;  %v698_v44 = vld [vmem:[%s4652_s1 + $0x180] sm:$0xff] }
 0x1f8   :  { %v1054_v61 = vpack.c.bf16 %v998_v17, %v996_v22 }
 0x1fd   :  { %1477 = vmatmul.bf16.gmra.mxu1 %v3518_v26  ;;  %v877_v62 = vpop.permute.xlu1 %876 }
 0x1fe   :  { %v857_v52 = vpop.permute.xlu2 %856  ;;  %v1000_v2 = vmul.f32 %v877_v62, %v706_v33  ;;  %v1001_v42 = vmul.f32 %v877_v62, %v707_v15  ;;  %v997_v62 = vmul.f32 %v867_v36, %v703_v47  ;;  %v3629_v15 = vor.u32 %v2597_v39, %v2419_v35  ;;  %v693_v47 = vld [vmem:[%s4652_s1 + $0x158] sm:$0xff]  ;;  %v682_v35 = vld [vmem:[%s4652_s1 + $0x100] sm:$0xff]  ;;  %v688_v39 = vld [vmem:[%s4652_s1 + $0x130] sm:$0xff] }
 0x1ff   :  { %1557 = vmatmul.bf16.gmra.mxu2 %v3544_v50 }
 0x200   :  { %v1056_v8 = vpack.c.bf16 %v1002_v59, %v1000_v2  ;;  %v1057_v60 = vpack.c.bf16 %v1003_v9, %v1001_v42  ;;  %v1055_v33 = vpack.c.bf16 %v999_v18, %v997_v62  ;;  %v2351_v59 = vld [vmem:[%s4653_s3 + $0xa8] sm:$0xf]  ;;  %v692_v9 = vld [vmem:[%s4652_s1 + $0x150] sm:$0xff]  ;;  %v689_v62 = vld [vmem:[%s4652_s1 + $0x138] sm:$0xff] }
 0x205   :  { %2527 = vmatmul.msk.bf16.gmra.mxu3 %vm1385_vm2, %v3528_v20  ;;  %v847_v4 = vpop.permute.xlu1 %846 }
 0x206   :  { %v852_v12 = vpop.permute.xlu2 %851 }
 0x207   :  { %v990_v3 = vmul.f32 %v852_v12, %v696_v29  ;;  %v2431_v29 = vld [vmem:[%s4653_s3 + $0x140] sm:$0xf] }
 0x20d   :  { %1482 = vmatmul.bf16.gmra.mxu1 %v3546_v30 }
 0x20e   :  { %v827_v46 = vpop.permute.xlu2 %826 }
 0x215   :  { %2528 = vmatmul.msk.bf16.gmra.mxu3 %vm1385_vm2, %v3556_v1  ;;  %v892_v28 = vpop.permute.xlu0 %891 }
 0x216   :  { %v1006_v13 = vmul.f32 %v892_v28, %v712_v38  ;;  %v1007_v48 = vmul.f32 %v892_v28, %v713_v7  ;;  %v699_v38 = vld [vmem:[%s4652_s1 + $0x188] sm:$0xff]  ;;  %v694_v7 = vld [vmem:[%s4652_s1 + $0x160] sm:$0xff] }
 0x217   :  { %v695_v28 = vld [vmem:[%s4652_s1 + $0x168] sm:$0xff]  ;;  %v988_v57 = vmul.f32 %v847_v4, %v694_v7 }
 0x218   :  { %v1058_v5 = vpack.c.bf16 %v1006_v13, %v1004_v11  ;;  %v1059_v21 = vpack.c.bf16 %v1007_v48, %v1005_v0  ;;  %v697_v11 = vld [vmem:[%s4652_s1 + $0x178] sm:$0xff]  ;;  %v992_v0 = vmul.f32 %v857_v52, %v698_v44  ;;  %v993_v13 = vmul.f32 %v857_v52, %v699_v38  ;;  %v842_v48 = vpop.permute.xlu1 %841  ;;  %v691_v52 = vld [vmem:[%s4652_s1 + $0x148] sm:$0xff] }
 0x219   :  { %v989_v2 = vmul.f32 %v847_v4, %v695_v28  ;;  %v991_v42 = vmul.f32 %v852_v12, %v697_v11  ;;  %v2581_v4 = vld [vmem:[%s4653_s3 + $0xb0] sm:$0xf0]  ;;  %v1050_v12 = vpack.c.bf16 %v990_v3, %v988_v57  ;;  %v987_v22 = vmul.f32 %v842_v48, %v693_v47  ;;  %v685_v28 = vld [vmem:[%s4652_s1 + $0x118] sm:$0xff]  ;;  %v822_v11 = vpop.permute.xlu2 %821  ;;  %v2584_v47 = vld [vmem:[%s4653_s3 + $0xc8] sm:$0xf0] }
 0x21a   :  { %1563 = vmatpush.bf16.msra.mxu2 %v1058_v5  ;;  %1905 = vmatpush.bf16.msrb.mxu0 %v1059_v21  ;;  %v690_v21 = vld [vmem:[%s4652_s1 + $0x140] sm:$0xff] }
 0x21d   :  { %1487 = vmatmul.bf16.gmra.mxu1 %v3590_v45  ;;  %v862_v27 = vpop.permute.xlu0 %861 }
 0x21e   :  { %1564 = vmatpush.bf16.msra.mxu2 %v1056_v8  ;;  %1906 = vmatpush.bf16.msrb.mxu0 %v1057_v60  ;;  %v994_v36 = vmul.f32 %v862_v27, %v700_v51  ;;  %v995_v56 = vmul.f32 %v862_v27, %v701_v10  ;;  %v1051_v8 = vpack.c.bf16 %v991_v42, %v989_v2  ;;  %v686_v10 = vld [vmem:[%s4652_s1 + $0x120] sm:$0xff]  ;;  %v687_v27 = vld [vmem:[%s4652_s1 + $0x128] sm:$0xff] }
 0x21f   :  { %v3657_v51 = vor.u32 %v2581_v4, %v2351_v59  ;;  %v986_v60 = vmul.f32 %v842_v48, %v692_v9  ;;  %v2363_v9 = vld [vmem:[%s4653_s3 + $0xc0] sm:$0xf] }
 0x220   :  { %v1052_v5 = vpack.c.bf16 %v994_v36, %v992_v0  ;;  %v1053_v34 = vpack.c.bf16 %v995_v56, %v993_v13  ;;  %v817_v44 = vpop.permute.xlu1 %816  ;;  %v2600_v36 = vld [vmem:[%s4653_s3 + $0x148] sm:$0xf0]  ;;  %v980_v56 = vmul.f32 %v827_v46, %v686_v10  ;;  %v981_v13 = vmul.f32 %v827_v46, %v687_v27  ;;  %v2269_v46 = vld [vmem:[%s4653_s3 + $0xc] sm:$0xf0] }
 0x221   :  { %v976_v3 = vmul.f32 %v817_v44, %v682_v35  ;;  %v3690_v42 = vor.u32 %v2600_v36, %v2431_v29  ;;  %v2281_v35 = vld [vmem:[%s4653_s3 + $0x24] sm:$0xf0] }
 0x222   :  { %1565 = vmatpush.bf16.msra.mxu2 %v1054_v61  ;;  %1907 = vmatpush.bf16.msrb.mxu0 %v1055_v33  ;;  %v683_v61 = vld [vmem:[%s4652_s1 + $0x108] sm:$0xff]  ;;  %v684_v33 = vld [vmem:[%s4652_s1 + $0x110] sm:$0xff] }
 0x223   :  { %v977_v2 = vmul.f32 %v817_v44, %v683_v61 }
 0x225   :  { %2529 = vmatmul.msk.bf16.gmra.mxu3 %vm1385_vm2, %v3629_v15  ;;  %v837_v14 = vpop.permute.xlu0 %836 }
 0x226   :  { %1566 = vmatpush.bf16.msra.mxu2 %v1052_v5  ;;  %1908 = vmatpush.bf16.msrb.mxu0 %v1053_v34  ;;  %v984_v17 = vmul.f32 %v837_v14, %v690_v21  ;;  %v985_v18 = vmul.f32 %v837_v14, %v691_v52  ;;  %v978_v5 = vmul.f32 %v822_v11, %v684_v33  ;;  %v2559_v14 = vld [vmem:[%s4653_s3 + $0x4] sm:$0xf]  ;;  %v2293_v33 = vld [vmem:[%s4653_s3 + $0x3c] sm:$0xf0] }
 0x227   :  { %v979_v21 = vmul.f32 %v822_v11, %v685_v28  ;;  %v2387_v11 = vld [vmem:[%s4653_s3 + $0xf0] sm:$0xf] }
 0x228   :  { %v1048_v38 = vpack.c.bf16 %v986_v60, %v984_v17  ;;  %v1049_v7 = vpack.c.bf16 %v987_v22, %v985_v18  ;;  %v1044_v59 = vpack.c.bf16 %v978_v5, %v976_v3  ;;  %v3709_v18 = vor.u32 %v2584_v47, %v2363_v9  ;;  %v2443_v60 = vld [vmem:[%s4653_s3 + $0x158] sm:$0xf]  ;;  %v2609_v5 = vld [vmem:[%s4653_s3 + $0x190] sm:$0xf0] }
 0x229   :  { %v1045_v4 = vpack.c.bf16 %v979_v21, %v977_v2  ;;  %v2467_v2 = vld [vmem:[%s4653_s3 + $0x188] sm:$0xf]  ;;  %v2593_v9 = vld [vmem:[%s4653_s3 + $0x110] sm:$0xf0] }
 0x22a   :  { %1567 = vmatpush.bf16.msra.mxu2 %v1050_v12  ;;  %1909 = vmatpush.bf16.msrb.mxu0 %v1051_v8  ;;  %v2272_v12 = vor.u32 %v2559_v14, %v2269_v46  ;;  %v2568_v14 = vld [vmem:[%s4653_s3 + $0x4c] sm:$0xf]  ;;  %v2305_v46 = vld [vmem:[%s4653_s3 + $0x54] sm:$0xf0] }
 0x22d   :  { %1492 = vmatmul.bf16.gmra.mxu1 %v3657_v51  ;;  %v832_v0 = vpop.permute.xlu0 %831 }
 0x22e   :  { %v982_v48 = vmul.f32 %v832_v0, %v688_v39  ;;  %v983_v57 = vmul.f32 %v832_v0, %v689_v62  ;;  %1568 = vmatpush.bf16.msra.mxu2 %v1048_v38  ;;  %1910 = vmatpush.bf16.msrb.mxu0 %v1049_v7  ;;  %v2375_v39 = vld [vmem:[%s4653_s3 + $0xd8] sm:$0xf]  ;;  %v2587_v62 = vld [vmem:[%s4653_s3 + $0xe0] sm:$0xf0]  ;;  %v2455_v38 = vld [vmem:[%s4653_s3 + $0x170] sm:$0xf] }
 0x22f   :  { %v3746_v44 = vor.u32 %v2587_v62, %v2375_v39  ;;  %v2606_v7 = vld [vmem:[%s4653_s3 + $0x178] sm:$0xf0] }
 0x230   :  { %v1046_v34 = vpack.c.bf16 %v982_v48, %v980_v56  ;;  %v1047_v52 = vpack.c.bf16 %v983_v57, %v981_v13  ;;  %v2565_v56 = vld [vmem:[%s4653_s3 + $0x34] sm:$0xf]  ;;  %v2590_v0 = vld [vmem:[%s4653_s3 + $0xf8] sm:$0xf0] }
 0x231   :  { %v2296_v28 = vor.u32 %v2565_v56, %v2293_v33  ;;  %v3781_v57 = vor.u32 %v2590_v0, %v2387_v11  ;;  %v2317_v56 = vld [vmem:[%s4653_s3 + $0x6c] sm:$0xf0]  ;;  %v2596_v11 = vld [vmem:[%s4653_s3 + $0x128] sm:$0xf0] }
 0x232   :  { %1569 = vmatpush.bf16.msra.mxu2 %v1046_v34  ;;  %1911 = vmatpush.bf16.msrb.mxu0 %v1047_v52  ;;  %v3794_v34 = vor.u32 %v2609_v5, %v2467_v2 }
 0x234   :  { %4686 = vst [vmem:[#allocation15_spill] sm:$0xff] %v3794_v34 }
 0x235   :  { %2530 = vmatmul.msk.bf16.gmra.mxu3 %vm1385_vm2, %v3690_v42 }
 0x236   :  { %1570 = vmatpush.bf16.msra.mxu2 %v1044_v59  ;;  %1912 = vmatpush.bf16.msrb.mxu0 %v1045_v4  ;;  %v2308_v4 = vor.u32 %v2568_v14, %v2305_v46  ;;  %v2491_v46 = vld [vmem:[%s4653_s3 + $0x1b8] sm:$0xf] }
 0x238   :  { %v3707_v17 = vpop.f32.mrf.mxu3 }
 0x239   :  { %1571 = vmatmul.bf16.vlgmr.msra.gmra.mxu2 %v2272_v12  ;;  %1913 = vmatmul.bf16.vlgmr.msrb.gmra.mxu0 %v2272_v12  ;;  %v2399_v12 = vld [vmem:[%s4653_s3 + $0x108] sm:$0xf] }
 0x23a   :  { %1680 = vmatpush.bf16.msrb.mxu2 %v3166_v25  ;;  %v3711_v8 = vpop.f32.mrf.mxu1  ;;  %v2603_v25 = vld [vmem:[%s4653_s3 + $0x160] sm:$0xf0] }
 0x23b   :  { %4678 = vst [vmem:[#allocation7_spill] sm:$0xff] %v3711_v8  ;;  %v3724_v10 = vor.u32 %v2603_v25, %v2443_v60  ;;  %v3816_v60 = vor.u32 %v2593_v9, %v2399_v12 }
 0x23d   :  { %1497 = vmatmul.bf16.gmra.mxu1 %v3709_v18  ;;  %4679 = vst [vmem:[#allocation8_spill] sm:$0xff] %v3724_v10 }
 0x23e   :  { %1681 = vmatpush.bf16.msrb.mxu2 %v3175_v31  ;;  %v2562_v31 = vld [vmem:[%s4653_s3 + $0x1c] sm:$0xf] }
 0x240   :  { %v3722_v22 = vpop.f32.mrf.mxu3 }
 0x242   :  { %1682 = vmatpush.bf16.msrb.mxu2 %v3178_v53  ;;  %v3726_v27 = vpop.f32.mrf.mxu1  ;;  %v2284_v53 = vor.u32 %v2562_v31, %v2281_v35  ;;  %v3779_v48 = vpop.f32.mrf.mxu2  ;;  %v2479_v35 = vld [vmem:[%s4653_s3 + $0x1a0] sm:$0xf] }
 0x243   :  { %4680 = vst [vmem:[#allocation9_spill] sm:$0xff] %v3726_v27 }
 0x244   :  { %4684 = vst [vmem:[#allocation13_spill] sm:$0xff] %v3779_v48 }
 0x245   :  { %2531 = vmatmul.msk.bf16.gmra.mxu3 %vm1385_vm2, %v3724_v10 }
 0x246   :  { %1683 = vmatpush.bf16.msrb.mxu2 %v3209_v55 }
 0x248   :  { %v3744_v61 = vpop.f32.mrf.mxu3 }
 0x249   :  { %1576 = vmatmul.bf16.gmra.mxu2 %v2284_v53  ;;  %1918 = vmatmul.bf16.gmra.mxu0 %v2284_v53  ;;  %v2612_v53 = vld [vmem:[%s4653_s3 + $0x1a8] sm:$0xf0] }
 0x24a   :  { %1684 = vmatpush.bf16.msrb.mxu2 %v3316_v24  ;;  %v3748_v55 = vpop.f32.mrf.mxu1  ;;  %v3759_v24 = vor.u32 %v2606_v7, %v2455_v38  ;;  %v3804_v59 = vpop.f32.mrf.mxu2  ;;  %v3831_v62 = vor.u32 %v2612_v53, %v2479_v35  ;;  %v2571_v7 = vld [vmem:[%s4653_s3 + $0x64] sm:$0xf] }
 0x24b   :  { %4681 = vst [vmem:[#allocation10_spill] sm:$0xff] %v3748_v55  ;;  %v2320_v33 = vor.u32 %v2571_v7, %v2317_v56  ;;  %v2574_v7 = vld [vmem:[%s4653_s3 + $0x7c] sm:$0xf]  ;;  %v2329_v56 = vld [vmem:[%s4653_s3 + $0x84] sm:$0xf0] }
 0x24c   :  { %4682 = vst [vmem:[#allocation11_spill] sm:$0xff] %v3759_v24 }
 0x24d   :  { %1502 = vmatmul.bf16.gmra.mxu1 %v3746_v44  ;;  %4688 = vst [vmem:[#allocation17_spill] sm:$0xff] %v3804_v59 }
 0x24e   :  { %4691 = vst [vmem:[#allocation20_spill] sm:$0xff] %v3831_v62 }
 0x250   :  { %v3757_v29 = vpop.f32.mrf.mxu3 }
 0x252   :  { %v3761_v36 = vpop.f32.mrf.mxu1  ;;  %v3820_v31 = vpop.f32.mrf.mxu2 }
 0x253   :  { %4683 = vst [vmem:[#allocation12_spill] sm:$0xff] %v3761_v36 }
 0x254   :  { %4690 = vst [vmem:[#allocation19_spill] sm:$0xff] %v3820_v31 }
 0x255   :  { %2532 = vmatmul.msk.bf16.gmra.mxu3 %vm1385_vm2, %v3759_v24 }
 0x258   :  { %v3777_v13 = vpop.f32.mrf.mxu3 }
 0x259   :  { %1581 = vmatmul.bf16.gmra.mxu2 %v2296_v28  ;;  %1923 = vmatmul.bf16.gmra.mxu0 %v2296_v28  ;;  %v2411_v28 = vld [vmem:[%s4653_s3 + $0x120] sm:$0xf] }
 0x25a   :  { %v3783_v3 = vpop.f32.mrf.mxu1  ;;  %v3849_v0 = vpop.f32.mrf.mxu2  ;;  %v3853_v5 = vor.u32 %v2596_v11, %v2411_v28  ;;  %v2423_v28 = vld [vmem:[%s4653_s3 + $0x138] sm:$0xf]  ;;  %v2599_v11 = vld [vmem:[%s4653_s3 + $0x140] sm:$0xf0] }
 0x25b   :  { %4685 = vst [vmem:[#allocation14_spill] sm:$0xff] %v3783_v3 }
 0x25c   :  { %4693 = vst [vmem:[#allocation22_spill] sm:$0xff] %v3849_v0 }
 0x25d   :  { %1507 = vmatmul.bf16.gmra.mxu1 %v3781_v57 }
 0x260   :  { %v3792_v21 = vpop.f32.mrf.mxu3 }
 0x262   :  { %v3796_v52 = vpop.f32.mrf.mxu1  ;;  %v3866_v9 = vpop.f32.mrf.mxu2 }
 0x263   :  { %4687 = vst [vmem:[#allocation16_spill] sm:$0xff] %v3796_v52 }
 0x264   :  { %4695 = vst [vmem:[#allocation24_spill] sm:$0xff] %v3866_v9 }
 0x265   :  { %2533 = vmatmul.msk.bf16.gmra.mxu3 %vm1385_vm2, %v3794_v34  ;;  %v2567_v34 = vld [vmem:[%s4653_s3 + $0x40] sm:$0xf0] }
 0x268   :  { %v3814_v47 = vpop.f32.mrf.mxu3 }
 0x269   :  { %1586 = vmatmul.bf16.gmra.mxu2 %v2308_v4  ;;  %1928 = vmatmul.bf16.gmra.mxu0 %v2308_v4  ;;  %v2615_v4 = vld [vmem:[%s4653_s3 + $0x1c0] sm:$0xf0] }
 0x26a   :  { %v3818_v25 = vpop.f32.mrf.mxu1  ;;  %v3868_v35 = vor.u32 %v2615_v4, %v2491_v46  ;;  %v3888_v4 = vor.u32 %v2599_v11, %v2423_v28 }
 0x26b   :  { %4689 = vst [vmem:[#allocation18_spill] sm:$0xff] %v3818_v25  ;;  %v2341_v25 = vld [vmem:[%s4653_s3 + $0x9c] sm:$0xf0] }
 0x26c   :  { %4696 = vst [vmem:[#allocation25_spill] sm:$0xff] %v3868_v35 }
 0x26d   :  { %1512 = vmatmul.bf16.gmra.mxu1 %v3816_v60 }
 0x270   :  { %v3829_v39 = vpop.f32.mrf.mxu3 }
 0x272   :  { %v3833_v38 = vpop.f32.mrf.mxu1 }
 0x273   :  { %4692 = vst [vmem:[#allocation21_spill] sm:$0xff] %v3833_v38 }
 0x275   :  { %2534 = vmatmul.msk.bf16.gmra.mxu3 %vm1385_vm2, %v3831_v62  ;;  %v2564_v62 = vld [vmem:[%s4653_s3 + $0x28] sm:$0xf0] }
 0x278   :  { %v3851_v2 = vpop.f32.mrf.mxu3 }
 0x279   :  { %1591 = vmatmul.bf16.gmra.mxu2 %v2320_v33  ;;  %1933 = vmatmul.bf16.gmra.mxu0 %v2320_v33  ;;  %v2332_v33 = vor.u32 %v2574_v7, %v2329_v56  ;;  %v2503_v7 = vld [vmem:[%s4653_s3 + $0x1d0] sm:$0xf]  ;;  %v2618_v56 = vld [vmem:[%s4653_s3 + $0x1d8] sm:$0xf0] }
 0x27a   :  { %v3855_v14 = vpop.f32.mrf.mxu1  ;;  %v3903_v28 = vor.u32 %v2618_v56, %v2503_v7  ;;  %v2435_v7 = vld [vmem:[%s4653_s3 + $0x150] sm:$0xf]  ;;  %v2602_v56 = vld [vmem:[%s4653_s3 + $0x158] sm:$0xf0] }
 0x27b   :  { %4694 = vst [vmem:[#allocation23_spill] sm:$0xff] %v3855_v14  ;;  %v3892_v14 = vpop.f32.mrf.mxu2  ;;  %v3925_v55 = vor.u32 %v2602_v56, %v2435_v7 }
 0x27c   :  { %4698 = vst [vmem:[#allocation27_spill] sm:$0xff] %v3892_v14 }
 0x27d   :  { %1517 = vmatmul.bf16.gmra.mxu1 %v3853_v5  ;;  %4699 = vst [vmem:[#allocation28_spill] sm:$0xff] %v3903_v28 }
 0x27e   :  { %4701 = vst [vmem:[#allocation30_spill] sm:$0xff] %v3925_v55 }
 0x280   :  { %v3864_v12 = vpop.f32.mrf.mxu3 }
 0x282   :  { %v3870_v53 = vpop.f32.mrf.mxu1 }
 0x283   :  { %4697 = vst [vmem:[#allocation26_spill] sm:$0xff] %v3870_v53  ;;  %v3913_v52 = vpop.f32.mrf.mxu2 }
 0x284   :  { %4700 = vst [vmem:[#allocation29_spill] sm:$0xff] %v3913_v52  ;;  %v2353_v52 = vld [vmem:[%s4653_s3 + $0xb4] sm:$0xf0] }
 0x285   :  { %2535 = vmatmul.msk.bf16.gmra.mxu3 %vm1385_vm2, %v3868_v35  ;;  %v2583_v35 = vld [vmem:[%s4653_s3 + $0xc4] sm:$0xf] }
 0x288   :  { %v3886_v46 = vpop.f32.mrf.mxu3 }
 0x289   :  { %1596 = vmatmul.bf16.gmra.mxu2 %v2332_v33  ;;  %1938 = vmatmul.bf16.gmra.mxu0 %v2332_v33  ;;  %v2577_v33 = vld [vmem:[%s4653_s3 + $0x94] sm:$0xf] }
 0x28a   :  { %v3890_v53 = vpop.f32.mrf.mxu1  ;;  %v2344_v3 = vor.u32 %v2577_v33, %v2341_v25  ;;  %v2515_v25 = vld [vmem:[%s4653_s3 + $0x1e8] sm:$0xf]  ;;  %v2621_v33 = vld [vmem:[%s4653_s3 + $0x1f0] sm:$0xf0] }
 0x28b   :  { %v3936_v8 = vpop.f32.mrf.mxu2  ;;  %v3940_v7 = vor.u32 %v2621_v33, %v2515_v25  ;;  %v2605_v25 = vld [vmem:[%s4653_s3 + $0x170] sm:$0xf0] }
 0x28c   :  { %4702 = vst [vmem:[#allocation31_spill] sm:$0xff] %v3936_v8  ;;  %v2447_v8 = vld [vmem:[%s4653_s3 + $0x168] sm:$0xf] }
 0x28d   :  { %1522 = vmatmul.bf16.gmra.mxu1 %v3888_v4  ;;  %4703 = vst [vmem:[#allocation32_spill] sm:$0xff] %v3940_v7  ;;  %v3962_v16 = vor.u32 %v2605_v25, %v2447_v8  ;;  %v2365_v8 = vld [vmem:[%s4653_s3 + $0xcc] sm:$0xf0] }
 0x28e   :  { %v2368_v25 = vor.u32 %v2583_v35, %v2365_v8  ;;  %v2586_v8 = vld [vmem:[%s4653_s3 + $0xdc] sm:$0xf] }
 0x28f   :  { %4705 = vst [vmem:[#allocation34_spill] sm:$0xff] %v3962_v16 }
 0x290   :  { %v3901_v38 = vpop.f32.mrf.mxu3 }
 0x292   :  { %v3905_v11 = vpop.f32.mrf.mxu1 }
 0x293   :  { %v3960_v14 = vpop.f32.mrf.mxu2 }
 0x294   :  { %4704 = vst [vmem:[#allocation33_spill] sm:$0xff] %v3960_v14  ;;  %v2561_v14 = vld [vmem:[%s4653_s3 + $0x10] sm:$0xf0] }
 0x295   :  { %2536 = vmatmul.msk.bf16.gmra.mxu3 %vm1385_vm2, %v3903_v28 }
 0x298   :  { %v3923_v36 = vpop.f32.mrf.mxu3 }
 0x299   :  { %1601 = vmatmul.bf16.gmra.mxu2 %v2344_v3  ;;  %1943 = vmatmul.bf16.gmra.mxu0 %v2344_v3  ;;  %v2580_v3 = vld [vmem:[%s4653_s3 + $0xac] sm:$0xf] }
 0x29a   :  { %v3927_v27 = vpop.f32.mrf.mxu1  ;;  %v2356_v28 = vor.u32 %v2580_v3, %v2353_v52 }
 0x29d   :  { %1527 = vmatmul.bf16.gmra.mxu1 %v3925_v55 }
 0x2a0   :  { %v3938_v50 = vpop.f32.mrf.mxu3 }
 0x2a2   :  { %v3942_v56 = vpop.f32.mrf.mxu1 }
 0x2a5   :  { %2537 = vmatmul.msk.bf16.gmra.mxu3 %vm1385_vm2, %v3940_v7  ;;  %v3971_v7 = vpop.f32.mrf.mxu2 }
 0x2a6   :  { %4706 = vst [vmem:[#allocation35_spill] sm:$0xff] %v3971_v7 }
 0x2a8   :  { %v3958_v33 = vpop.f32.mrf.mxu3 }
 0x2a9   :  { %1606 = vmatmul.bf16.gmra.mxu2 %v2356_v28  ;;  %1948 = vmatmul.bf16.gmra.mxu0 %v2356_v28  ;;  %v2275_v28 = vld [vmem:[%s4653_s3 + $0x8] sm:$0xf] }
 0x2aa   :  { %v3964_v9 = vpop.f32.mrf.mxu1  ;;  %v3988_v0 = vor.u32 %v2561_v14, %v2275_v28  ;;  %v2377_v14 = vld [vmem:[%s4653_s3 + $0xe4] sm:$0xf0] }
 0x2ad   :  { %1532 = vmatmul.bf16.gmra.mxu1 %v3962_v16 }
 0x2b0   :  { %v3967_v52 = vpop.f32.mrf.mxu3 }
 0x2b2   :  { %v3969_v3 = vpop.f32.mrf.mxu1 }
 0x2b5   :  { %1799 = vmatmul.bf16.vlgmr.msrb.gmra.mxu3 %v3356_v54 }
 0x2b6   :  { %v1914_v55 = vpop.f32.mrf.mxu0 }
 0x2b8   :  { %v3986_v7 = vpop.f32.mrf.mxu3 }
 0x2b9   :  { %1611 = vmatmul.bf16.gmra.mxu2 %v2368_v25  ;;  %1953 = vmatmul.bf16.gmra.mxu0 %v2368_v25  ;;  %v2380_v25 = vor.u32 %v2586_v8, %v2377_v14  ;;  %v2589_v14 = vld [vmem:[%s4653_s3 + $0xf4] sm:$0xf] }
 0x2ba   :  { %v3990_v6 = vpop.f32.mrf.mxu1 }
 0x2bc   :  { %v3992_v31 = vpop.f32.mrf.mxu2 }
 0x2bd   :  { %4707 = vst [vmem:[#allocation36_spill] sm:$0xff] %v3992_v31  ;;  %2538 = vmatmul.msk.bf16.vlgmr.msrb.gmra.mxu1 %vm1385_vm2, %v3988_v0  ;;  %v2287_v31 = vld [vmem:[%s4653_s3 + $0x20] sm:$0xf] }
 0x2be   :  { %v4017_v40 = vor.u32 %v2564_v62, %v2287_v31  ;;  %v2389_v31 = vld [vmem:[%s4653_s3 + $0xfc] sm:$0xf0] }
 0x2c0   :  { %v3996_v54 = vpop.f32.mrf.mxu3  ;;  %4711 = vst [vmem:[#allocation40_spill] sm:$0xff] %v4017_v40 }
 0x2c1   :  { %4708 = vst [vmem:[#allocation37_spill] sm:$0xff] %v3996_v54 }
 0x2c2   :  { %v3998_v35 = vpop.f32.mrf.mxu1 }
 0x2c4   :  { %v4006_v28 = vpop.f32.mrf.mxu2 }
 0x2c5   :  { %4709 = vst [vmem:[#allocation38_spill] sm:$0xff] %v4006_v28  ;;  %1804 = vmatmul.bf16.gmra.mxu3 %v3434_v37 }
 0x2c8   :  { %v4015_v59 = vpop.f32.mrf.mxu3 }
 0x2c9   :  { %4710 = vst [vmem:[#allocation39_spill] sm:$0xff] %v4015_v59  ;;  %1616 = vmatmul.bf16.gmra.mxu2 %v2380_v25  ;;  %1958 = vmatmul.bf16.gmra.mxu0 %v2380_v25  ;;  %v2392_v25 = vor.u32 %v2589_v14, %v2389_v31  ;;  %v2592_v31 = vld [vmem:[%s4653_s3 + $0x10c] sm:$0xf] }
 0x2ca   :  { %v4019_v48 = vpop.f32.mrf.mxu1 }
 0x2cc   :  { %v4021_v28 = vpop.f32.mrf.mxu2 }
 0x2cd   :  { %4712 = vst [vmem:[#allocation41_spill] sm:$0xff] %v4021_v28  ;;  %2539 = vmatmul.msk.bf16.gmra.mxu1 %vm1385_vm2, %v4017_v40  ;;  %v2299_v28 = vld [vmem:[%s4653_s3 + $0x38] sm:$0xf] }
 0x2ce   :  { %v4046_v24 = vor.u32 %v2567_v34, %v2299_v28  ;;  %v2401_v34 = vld [vmem:[%s4653_s3 + $0x114] sm:$0xf0] }
 0x2d0   :  { %v4025_v37 = vpop.f32.mrf.mxu3  ;;  %4716 = vst [vmem:[#allocation45_spill] sm:$0xff] %v4046_v24 }
 0x2d1   :  { %4713 = vst [vmem:[#allocation42_spill] sm:$0xff] %v4025_v37 }
 0x2d2   :  { %v4027_v8 = vpop.f32.mrf.mxu1 }
 0x2d4   :  { %v4035_v62 = vpop.f32.mrf.mxu2 }
 0x2d5   :  { %4714 = vst [vmem:[#allocation43_spill] sm:$0xff] %v4035_v62  ;;  %1809 = vmatmul.bf16.gmra.mxu3 %v3462_v43 }
 0x2d8   :  { %v4044_v23 = vpop.f32.mrf.mxu3 }
 0x2d9   :  { %4715 = vst [vmem:[#allocation44_spill] sm:$0xff] %v4044_v23  ;;  %1621 = vmatmul.bf16.gmra.mxu2 %v2392_v25  ;;  %1963 = vmatmul.bf16.gmra.mxu0 %v2392_v25  ;;  %v2404_v25 = vor.u32 %v2592_v31, %v2401_v34  ;;  %v2595_v34 = vld [vmem:[%s4653_s3 + $0x124] sm:$0xf] }
 0x2da   :  { %v4048_v37 = vpop.f32.mrf.mxu1 }
 0x2dc   :  { %v4050_v62 = vpop.f32.mrf.mxu2 }
 0x2dd   :  { %4717 = vst [vmem:[#allocation46_spill] sm:$0xff] %v4050_v62  ;;  %2540 = vmatmul.msk.bf16.gmra.mxu1 %vm1385_vm2, %v4046_v24  ;;  %v2311_v62 = vld [vmem:[%s4653_s3 + $0x50] sm:$0xf] }
 0x2e0   :  { %v4054_v43 = vpop.f32.mrf.mxu3 }
 0x2e1   :  { %4718 = vst [vmem:[#allocation47_spill] sm:$0xff] %v4054_v43  ;;  %v2570_v43 = vld [vmem:[%s4653_s3 + $0x58] sm:$0xf0] }
 0x2e2   :  { %v4056_v14 = vpop.f32.mrf.mxu1  ;;  %v4075_v24 = vor.u32 %v2570_v43, %v2311_v62  ;;  %v2413_v62 = vld [vmem:[%s4653_s3 + $0x12c] sm:$0xf0] }
 0x2e4   :  { %v4064_v28 = vpop.f32.mrf.mxu2  ;;  %4721 = vst [vmem:[#allocation50_spill] sm:$0xff] %v4075_v24 }
 0x2e5   :  { %4719 = vst [vmem:[#allocation48_spill] sm:$0xff] %v4064_v28  ;;  %1814 = vmatmul.bf16.gmra.mxu3 %v3490_v58 }
 0x2e8   :  { %v4073_v23 = vpop.f32.mrf.mxu3 }
 0x2e9   :  { %4720 = vst [vmem:[#allocation49_spill] sm:$0xff] %v4073_v23  ;;  %1626 = vmatmul.bf16.gmra.mxu2 %v2404_v25  ;;  %1968 = vmatmul.bf16.gmra.mxu0 %v2404_v25  ;;  %v2416_v25 = vor.u32 %v2595_v34, %v2413_v62  ;;  %v2598_v62 = vld [vmem:[%s4653_s3 + $0x13c] sm:$0xf] }
 0x2ea   :  { %v4077_v16 = vpop.f32.mrf.mxu1 }
 0x2ec   :  { %v4079_v28 = vpop.f32.mrf.mxu2 }
 0x2ed   :  { %4722 = vst [vmem:[#allocation51_spill] sm:$0xff] %v4079_v28  ;;  %2541 = vmatmul.msk.bf16.gmra.mxu1 %vm1385_vm2, %v4075_v24  ;;  %v2323_v28 = vld [vmem:[%s4653_s3 + $0x68] sm:$0xf] }
 0x2f0   :  { %v4083_v58 = vpop.f32.mrf.mxu3 }
 0x2f1   :  { %4723 = vst [vmem:[#allocation52_spill] sm:$0xff] %v4083_v58  ;;  %v2573_v58 = vld [vmem:[%s4653_s3 + $0x70] sm:$0xf0] }
 0x2f2   :  { %v4085_v31 = vpop.f32.mrf.mxu1  ;;  %v4104_v24 = vor.u32 %v2573_v58, %v2323_v28  ;;  %v2425_v28 = vld [vmem:[%s4653_s3 + $0x144] sm:$0xf0] }
 0x2f4   :  { %v4093_v43 = vpop.f32.mrf.mxu2  ;;  %4726 = vst [vmem:[#allocation55_spill] sm:$0xff] %v4104_v24 }
 0x2f5   :  { %4724 = vst [vmem:[#allocation53_spill] sm:$0xff] %v4093_v43  ;;  %1819 = vmatmul.bf16.gmra.mxu3 %v3518_v26 }
 0x2f8   :  { %v4102_v23 = vpop.f32.mrf.mxu3 }
 0x2f9   :  { %4725 = vst [vmem:[#allocation54_spill] sm:$0xff] %v4102_v23  ;;  %1631 = vmatmul.bf16.gmra.mxu2 %v2416_v25 }
 0x2fa   :  { %v4106_v59 = vpop.f32.mrf.mxu1 }
 0x2fc   :  { %v4108_v10 = vpop.f32.mrf.mxu2 }
 0x2fd   :  { %4727 = vst [vmem:[#allocation56_spill] sm:$0xff] %v4108_v10  ;;  %2542 = vmatmul.msk.bf16.gmra.mxu1 %vm1385_vm2, %v4104_v24  ;;  %v2428_v10 = vor.u32 %v2598_v62, %v2425_v28  ;;  %v2601_v62 = vld [vmem:[%s4653_s3 + $0x154] sm:$0xf] }
 0x300   :  { %v4112_v26 = vpop.f32.mrf.mxu3 }
 0x301   :  { %4728 = vst [vmem:[#allocation57_spill] sm:$0xff] %v4112_v26 }
 0x302   :  { %v4114_v34 = vpop.f32.mrf.mxu1 }
 0x304   :  { %v4122_v58 = vpop.f32.mrf.mxu2 }
 0x305   :  { %4729 = vst [vmem:[#allocation58_spill] sm:$0xff] %v4122_v58  ;;  %1824 = vmatmul.bf16.gmra.mxu3 %v3546_v30 }
 0x308   :  { %v4125_v43 = vpop.f32.mrf.mxu3 }
 0x309   :  { %1636 = vmatmul.bf16.gmra.mxu2 %v2428_v10 }
 0x30a   :  { %v4127_v23 = vpop.f32.mrf.mxu1 }
 0x30c   :  { %v1597_v26 = vpop.f32.mrf.mxu2 }
 0x30d   :  { %2543 = vmatmul.msk.bf16.gmra.mxu1 %vm1385_vm2, %v3319_v32  ;;  %v1598_v24 = vadd.f32 %v1597_v26, %v3890_v53  ;;  %v2437_v32 = vld [vmem:[%s4653_s3 + $0x15c] sm:$0xf0] }
 0x30f   :  { %v1712_v40 = vadd.f32 %v3707_v17, %v1598_v24  ;;  %v2440_v24 = vor.u32 %v2601_v62, %v2437_v32  ;;  %v2604_v32 = vld [vmem:[%s4653_s3 + $0x16c] sm:$0xf] }
 0x310   :  { %v4133_v54 = vpop.f32.mrf.mxu3 }
 0x311   :  { %4730 = vst [vmem:[#allocation59_spill] sm:$0xff] %v4133_v54 }
 0x312   :  { %2154 = vst [vmem:[%s4654_s4 + $0xa0] sm:$0xff] %v1712_v40  ;;  %v4138_v30 = vpop.f32.mrf.mxu1  ;;  %v1916_v40 = vpop.f32.mrf.mxu0  ;;  %1973 = vmatmul.bf16.gmra.mxu0 %v2416_v25 }
 0x314   :  { %v1599_v53 = vpop.f32.mrf.mxu2 }
 0x315   :  { %1829 = vmatmul.bf16.gmra.mxu3 %v3590_v45  ;;  %v1600_v17 = vadd.f32 %v1599_v53, %v3905_v11 }
 0x317   :  { %v1714_v26 = vadd.f32 %v3722_v22, %v1600_v17 }
 0x318   :  { %v4149_v28 = vpop.f32.mrf.mxu3 }
 0x319   :  { %2156 = vst [vmem:[%s4654_s4 + $0xb0] sm:$0xff] %v1714_v26  ;;  %1641 = vmatmul.bf16.gmra.mxu2 %v2440_v24 }
 0x31a   :  { %v4154_v58 = vpop.f32.mrf.mxu1  ;;  %v1919_v62 = vpop.f32.mrf.mxu0 }
 0x31c   :  { %v1602_v54 = vpop.f32.mrf.mxu2 }
 0x31d   :  { %2544 = vmatmul.msk.bf16.gmra.mxu1 %vm1385_vm2, %v3397_v19  ;;  %v1603_v45 = vadd.f32 %v1602_v54, %v3927_v27  ;;  %v2449_v19 = vld [vmem:[%s4653_s3 + $0x174] sm:$0xf0] }
 0x31e   :  { %v2452_v54 = vor.u32 %v2604_v32, %v2449_v19  ;;  %v2607_v19 = vld [vmem:[%s4653_s3 + $0x184] sm:$0xf] }
 0x31f   :  { %v1717_v11 = vadd.f32 %v3744_v61, %v1603_v45 }
 0x320   :  { %v4160_v22 = vpop.f32.mrf.mxu3 }
 0x321   :  { %2158 = vst [vmem:[%s4654_s4 + $0xc0] sm:$0xff] %v1717_v11 }
 0x322   :  { %v4165_v25 = vpop.f32.mrf.mxu1  ;;  %v1921_v26 = vpop.f32.mrf.mxu0  ;;  %1978 = vmatmul.bf16.gmra.mxu0 %v2428_v10 }
 0x324   :  { %v1604_v27 = vpop.f32.mrf.mxu2 }
 0x325   :  { %1834 = vmatmul.bf16.gmra.mxu3 %v3657_v51  ;;  %v1605_v61 = vadd.f32 %v1604_v27, %v3942_v56 }
 0x327   :  { %v1719_v53 = vadd.f32 %v3757_v29, %v1605_v61 }
 0x328   :  { %v4176_v17 = vpop.f32.mrf.mxu3 }
 0x329   :  { %4731 = vst [vmem:[#allocation60_spill] sm:$0xff] %v4176_v17  ;;  %1646 = vmatmul.bf16.gmra.mxu2 %v2452_v54 }
 0x32a   :  { %2160 = vst [vmem:[%s4654_s4 + $0xd0] sm:$0xff] %v1719_v53  ;;  %v4181_v45 = vpop.f32.mrf.mxu1  ;;  %v4189_v32 = vpop.f32.mrf.mxu0 }
 0x32c   :  { %v1607_v11 = vpop.f32.mrf.mxu2 }
 0x32d   :  { %2545 = vmatmul.msk.bf16.gmra.mxu1 %vm1385_vm2, %v3444_v63  ;;  %v1608_v51 = vadd.f32 %v1607_v11, %v3964_v9  ;;  %v2461_v63 = vld [vmem:[%s4653_s3 + $0x18c] sm:$0xf0] }
 0x32e   :  { %v2464_v27 = vor.u32 %v2607_v19, %v2461_v63 }
 0x32f   :  { %v1722_v56 = vadd.f32 %v3777_v13, %v1608_v51 }
 0x330   :  { %v4187_v29 = vpop.f32.mrf.mxu3 }
 0x331   :  { %4732 = vst [vmem:[#allocation61_spill] sm:$0xff] %v4187_v29 }
 0x332   :  { %2162 = vst [vmem:[%s4654_s4 + $0xe0] sm:$0xff] %v1722_v56  ;;  %v4194_v10 = vpop.f32.mrf.mxu1  ;;  %v4205_v51 = vpop.f32.mrf.mxu0  ;;  %1983 = vmatmul.bf16.gmra.mxu0 %v2440_v24 }
 0x334   :  { %v1609_v9 = vpop.f32.mrf.mxu2 }
 0x335   :  { %1839 = vmatmul.bf16.gmra.mxu3 %v3709_v18  ;;  %v1610_v13 = vadd.f32 %v1609_v9, %v3969_v3 }
 0x337   :  { %v1724_v61 = vadd.f32 %v3792_v21, %v1610_v13 }
 0x338   :  { %v1800_v53 = vpop.f32.mrf.mxu3 }
 0x339   :  { %v1915_v11 = vadd.f32 %v1914_v55, %v1800_v53  ;;  %2164 = vst [vmem:[%s4654_s4 + $0xf0] sm:$0xff] %v1724_v61  ;;  %1651 = vmatmul.bf16.gmra.mxu2 %v2464_v27 }
 0x33a   :  { %v2028_v56 = vpop.f32.mrf.mxu1  ;;  %v4218_v24 = vpop.f32.mrf.mxu0 }
 0x33b   :  { %v2029_v29 = vadd.f32 %v2028_v56, %v1915_v11 }
 0x33c   :  { %v1612_v17 = vpop.f32.mrf.mxu2 }
 0x33d   :  { %2135 = vst.msk [vmem:[%s4654_s4 + $0x8] sm:$0xff] %vm2134_vm3, %v2029_v29  ;;  %2546 = vmatmul.msk.bf16.gmra.mxu1 %vm1385_vm2, %v3472_v49  ;;  %v1613_v18 = vadd.f32 %v1612_v17, %v3990_v6  ;;  %v2610_v29 = vld [vmem:[%s4653_s3 + $0x19c] sm:$0xf]  ;;  %v2473_v49 = vld [vmem:[%s4653_s3 + $0x1a4] sm:$0xf0] }
 0x33f   :  { %v1727_v55 = vadd.f32 %v3814_v47, %v1613_v18 }
 0x340   :  { %v1802_v21 = vpop.f32.mrf.mxu3 }
 0x341   :  { %v1917_v3 = vadd.f32 %v1916_v40, %v1802_v21  ;;  %2166 = vst [vmem:[%s4654_s4 + $0x100] sm:$0xff] %v1727_v55  ;;  %v2476_v40 = vor.u32 %v2610_v29, %v2473_v49  ;;  %v2613_v55 = vld [vmem:[%s4653_s3 + $0x1b4] sm:$0xf] }
 0x342   :  { %v2030_v19 = vpop.f32.mrf.mxu1  ;;  %v4236_v61 = vpop.f32.mrf.mxu0  ;;  %1988 = vmatmul.bf16.gmra.mxu0 %v2452_v54 }
 0x343   :  { %v2031_v6 = vadd.f32 %v2030_v19, %v1917_v3 }
 0x344   :  { %v1614_v17 = vpop.f32.mrf.mxu2 }
 0x345   :  { %2137 = vst.msk [vmem:[%s4654_s4 + $0x18] sm:$0xff] %vm2134_vm3, %v2031_v6  ;;  %1844 = vmatmul.bf16.gmra.mxu3 %v3746_v44  ;;  %v1615_v47 = vadd.f32 %v1614_v17, %v3998_v35 }
 0x347   :  { %v1729_v63 = vadd.f32 %v3829_v39, %v1615_v47 }
 0x348   :  { %v1805_v9 = vpop.f32.mrf.mxu3 }
 0x349   :  { %v1920_v13 = vadd.f32 %v1919_v62, %v1805_v9  ;;  %2168 = vst [vmem:[%s4654_s4 + $0x110] sm:$0xff] %v1729_v63  ;;  %1656 = vmatmul.bf16.gmra.mxu2 %v2476_v40  ;;  %v2616_v9 = vld [vmem:[%s4653_s3 + $0x1cc] sm:$0xf] }
 0x34a   :  { %v2033_v53 = vpop.f32.mrf.mxu1  ;;  %v4249_v54 = vpop.f32.mrf.mxu0 }
 0x34b   :  { %v2034_v11 = vadd.f32 %v2033_v53, %v1920_v13 }
 0x34c   :  { %v1617_v56 = vpop.f32.mrf.mxu2 }
 0x34d   :  { %2139 = vst.msk [vmem:[%s4654_s4 + $0x28] sm:$0xff] %vm2134_vm3, %v2034_v11  ;;  %2547 = vmatmul.msk.bf16.gmra.mxu1 %vm1385_vm2, %v3500_v41  ;;  %v1618_v44 = vadd.f32 %v1617_v56, %v4019_v48  ;;  %v2485_v41 = vld [vmem:[%s4653_s3 + $0x1bc] sm:$0xf0] }
 0x34f   :  { %v1732_v39 = vadd.f32 %v3851_v2, %v1618_v44 }
 0x350   :  { %v1807_v35 = vpop.f32.mrf.mxu3 }
 0x351   :  { %v1922_v62 = vadd.f32 %v1921_v26, %v1807_v35  ;;  %2170 = vst [vmem:[%s4654_s4 + $0x120] sm:$0xff] %v1732_v39  ;;  %v2488_v26 = vor.u32 %v2613_v55, %v2485_v41  ;;  %v2619_v55 = vld [vmem:[%s4653_s3 + $0x1e4] sm:$0xf] }
 0x352   :  { %v2035_v18 = vpop.f32.mrf.mxu1  ;;  %v4268_v49 = vpop.f32.mrf.mxu0  ;;  %1993 = vmatmul.bf16.gmra.mxu0 %v2464_v27 }
 0x353   :  { %v2036_v48 = vadd.f32 %v2035_v18, %v1922_v62 }
 0x354   :  { %v1619_v21 = vpop.f32.mrf.mxu2 }
 0x355   :  { %2141 = vst.msk [vmem:[%s4654_s4 + $0x38] sm:$0xff] %vm2134_vm3, %v2036_v48  ;;  %1849 = vmatmul.bf16.gmra.mxu3 %v3781_v57  ;;  %v1620_v2 = vadd.f32 %v1619_v21, %v4027_v8 }
 0x357   :  { %v1734_v3 = vadd.f32 %v3864_v12, %v1620_v2 }
 0x358   :  { %v1810_v19 = vpop.f32.mrf.mxu3 }
 0x359   :  { %v1925_v29 = vadd.f32 %v4189_v32, %v1810_v19  ;;  %2172 = vst [vmem:[%s4654_s4 + $0x130] sm:$0xff] %v1734_v3  ;;  %1661 = vmatmul.bf16.gmra.mxu2 %v2488_v26 }
 0x35a   :  { %v2038_v6 = vpop.f32.mrf.mxu1  ;;  %v4282_v27 = vpop.f32.mrf.mxu0 }
 0x35b   :  { %v2039_v17 = vadd.f32 %v2038_v6, %v1925_v29 }
 0x35c   :  { %v1622_v47 = vpop.f32.mrf.mxu2 }
 0x35d   :  { %2143 = vst.msk [vmem:[%s4654_s4 + $0x48] sm:$0xff] %vm2134_vm3, %v2039_v17  ;;  %2548 = vmatmul.msk.bf16.gmra.mxu1 %vm1385_vm2, %v3528_v20  ;;  %v1623_v57 = vadd.f32 %v1622_v47, %v4048_v37  ;;  %v2497_v20 = vld [vmem:[%s4653_s3 + $0x1d4] sm:$0xf0] }
 0x35e   :  { %v2500_v13 = vor.u32 %v2616_v9, %v2497_v20 }
 0x35f   :  { %v1737_v12 = vadd.f32 %v3886_v46, %v1623_v57 }
 0x360   :  { %v1812_v8 = vpop.f32.mrf.mxu3 }
 0x361   :  { %v1927_v32 = vadd.f32 %v4205_v51, %v1812_v8  ;;  %2174 = vst [vmem:[%s4654_s4 + $0x140] sm:$0xff] %v1737_v12 }
 0x362   :  { %v2040_v63 = vpop.f32.mrf.mxu1  ;;  %v4301_v44 = vpop.f32.mrf.mxu0  ;;  %1998 = vmatmul.bf16.gmra.mxu0 %v2476_v40 }
 0x363   :  { %v2041_v37 = vadd.f32 %v2040_v63, %v1927_v32 }
 0x364   :  { %v1624_v46 = vpop.f32.mrf.mxu2 }
 0x365   :  { %2145 = vst.msk [vmem:[%s4654_s4 + $0x58] sm:$0xff] %vm2134_vm3, %v2041_v37  ;;  %1854 = vmatmul.bf16.gmra.mxu3 %v3816_v60  ;;  %v1625_v51 = vadd.f32 %v1624_v46, %v4056_v14 }
 0x367   :  { %v1739_v53 = vadd.f32 %v3901_v38, %v1625_v51 }
 0x368   :  { %v1815_v11 = vpop.f32.mrf.mxu3 }
 0x369   :  { %v1930_v56 = vadd.f32 %v4218_v24, %v1815_v11  ;;  %2176 = vst [vmem:[%s4654_s4 + $0x150] sm:$0xff] %v1739_v53  ;;  %1666 = vmatmul.bf16.gmra.mxu2 %v2500_v13  ;;  %v4735_v11 = vld [vmem:[#allocation40_spill] sm:$0xff] }
 0x36a   :  { %v2043_v39 = vpop.f32.mrf.mxu1  ;;  %v1944_v40 = vpop.f32.mrf.mxu0 }
 0x36b   :  { %v2044_v35 = vadd.f32 %v2043_v39, %v1930_v56 }
 0x36c   :  { %v1627_v62 = vpop.f32.mrf.mxu2 }
 0x36d   :  { %2147 = vst.msk [vmem:[%s4654_s4 + $0x68] sm:$0xff] %vm2134_vm3, %v2044_v35  ;;  %2549 = vmatmul.msk.bf16.gmra.mxu1 %vm1385_vm2, %v3556_v1  ;;  %v1628_v60 = vadd.f32 %v1627_v62, %v4077_v16  ;;  %v2509_v1 = vld [vmem:[%s4653_s3 + $0x1ec] sm:$0xf0]  ;;  %v4737_v62 = vld [vmem:[#allocation39_spill] sm:$0xff] }
 0x36f   :  { %v1742_v38 = vadd.f32 %v3923_v36, %v1628_v60 }
 0x370   :  { %v1817_v14 = vpop.f32.mrf.mxu3 }
 0x371   :  { %v1932_v24 = vadd.f32 %v4236_v61, %v1817_v14  ;;  %2178 = vst [vmem:[%s4654_s4 + $0x160] sm:$0xff] %v1742_v38  ;;  %v2512_v61 = vor.u32 %v2619_v55, %v2509_v1  ;;  %v4738_v1 = vld [vmem:[#allocation34_spill] sm:$0xff] }
 0x372   :  { %v2045_v18 = vpop.f32.mrf.mxu1  ;;  %v1946_v3 = vpop.f32.mrf.mxu0  ;;  %2003 = vmatmul.bf16.gmra.mxu0 %v2488_v26 }
 0x373   :  { %v2046_v16 = vadd.f32 %v2045_v18, %v1932_v24 }
 0x374   :  { %v1629_v41 = vpop.f32.mrf.mxu2 }
 0x375   :  { %2149 = vst.msk [vmem:[%s4654_s4 + $0x78] sm:$0xff] %vm2134_vm3, %v2046_v16  ;;  %1859 = vmatmul.bf16.gmra.mxu3 %v3853_v5  ;;  %v1630_v36 = vadd.f32 %v1629_v41, %v4085_v31  ;;  %v4739_v16 = vld [vmem:[#allocation42_spill] sm:$0xff] }
 0x377   :  { %v1744_v48 = vadd.f32 %v3938_v50, %v1630_v36 }
 0x378   :  { %v1820_v21 = vpop.f32.mrf.mxu3 }
 0x379   :  { %v1935_v2 = vadd.f32 %v4249_v54, %v1820_v21  ;;  %2180 = vst [vmem:[%s4654_s4 + $0x170] sm:$0xff] %v1744_v48  ;;  %1671 = vmatmul.bf16.gmra.mxu2 %v2512_v61  ;;  %v4740_v21 = vld [vmem:[#allocation45_spill] sm:$0xff] }
 0x37a   :  { %v2048_v19 = vpop.f32.mrf.mxu1  ;;  %v1949_v26 = vpop.f32.mrf.mxu0 }
 0x37b   :  { %v2049_v29 = vadd.f32 %v2048_v19, %v1935_v2 }
 0x37c   :  { %v1632_v6 = vpop.f32.mrf.mxu2 }
 0x37d   :  { %2151 = vst.msk [vmem:[%s4654_s4 + $0x88] sm:$0xff] %vm2134_vm3, %v2049_v29  ;;  %2550 = vmatmul.msk.bf16.gmra.mxu1 %vm1385_vm2, %v3629_v15  ;;  %v1633_v50 = vadd.f32 %v1632_v6, %v4106_v59  ;;  %v4742_v6 = vld [vmem:[#allocation44_spill] sm:$0xff] }
 0x37f   :  { %v1747_v5 = vadd.f32 %v3958_v33, %v1633_v50 }
 0x380   :  { %v1822_v31 = vpop.f32.mrf.mxu3 }
 0x381   :  { %v1937_v54 = vadd.f32 %v4268_v49, %v1822_v31  ;;  %2182 = vst [vmem:[%s4654_s4 + $0x180] sm:$0xff] %v1747_v5 }
 0x382   :  { %v2050_v17 = vpop.f32.mrf.mxu1  ;;  %v1951_v12 = vpop.f32.mrf.mxu0  ;;  %2008 = vmatmul.bf16.gmra.mxu0 %v2500_v13 }
 0x383   :  { %v2051_v47 = vadd.f32 %v2050_v17, %v1937_v54 }
 0x384   :  { %v1634_v57 = vpop.f32.mrf.mxu2 }
 0x385   :  { %2153 = vst.msk [vmem:[%s4654_s4 + $0x98] sm:$0xff] %vm2134_vm3, %v2051_v47  ;;  %1864 = vmatmul.bf16.gmra.mxu3 %v3888_v4  ;;  %v1635_v15 = vadd.f32 %v1634_v57, %v4114_v34  ;;  %v4743_v57 = vld [vmem:[#allocation2_spill] sm:$0xff] }
 0x387   :  { %v1749_v59 = vadd.f32 %v3967_v52, %v1635_v15  ;;  %v4744_v15 = vld [vmem:[#allocation47_spill] sm:$0xff] }
 0x388   :  { %v1825_v33 = vpop.f32.mrf.mxu3 }
 0x389   :  { %v1940_v49 = vadd.f32 %v4282_v27, %v1825_v33  ;;  %2184 = vst [vmem:[%s4654_s4 + $0x190] sm:$0xff] %v1749_v59  ;;  %2517 = vmatmul.msk.bf16.vlgmr.msrb.gmra.mxu2 %vm1385_vm2, %v3988_v0 }
 0x38a   :  { %v2053_v8 = vpop.f32.mrf.mxu1  ;;  %v1954_v9 = vpop.f32.mrf.mxu0 }
 0x38b   :  { %v2054_v32 = vadd.f32 %v2053_v8, %v1940_v49  ;;  %v4745_v8 = vld [vmem:[#allocation50_spill] sm:$0xff] }
 0x38c   :  { %v1637_v63 = vpop.f32.mrf.mxu2 }
 0x38d   :  { %2155 = vst.msk [vmem:[%s4654_s4 + $0xa8] sm:$0xff] %vm2134_vm3, %v2054_v32  ;;  %2551 = vmatmul.msk.bf16.gmra.mxu1 %vm1385_vm2, %v3690_v42  ;;  %v1638_v4 = vadd.f32 %v1637_v63, %v4127_v23  ;;  %v4733_v42 = vld [vmem:[#allocation30_spill] sm:$0xff] }
 0x38f   :  { %v1752_v52 = vadd.f32 %v3986_v7, %v1638_v4  ;;  %v4734_v7 = vld [vmem:[#allocation37_spill] sm:$0xff] }
 0x390   :  { %v1827_v34 = vpop.f32.mrf.mxu3 }
 0x391   :  { %v1942_v27 = vadd.f32 %v4301_v44, %v1827_v34  ;;  %2186 = vst [vmem:[%s4654_s4 + $0x1a0] sm:$0xff] %v1752_v52  ;;  %v4747_v52 = vld [vmem:[#allocation13_spill] sm:$0xff] }
 0x392   :  { %v2055_v0 = vpop.f32.mrf.mxu1  ;;  %v1956_v53 = vpop.f32.mrf.mxu0  ;;  %2013 = vmatmul.bf16.gmra.mxu0 %v2512_v61 }
 0x393   :  { %v2056_v20 = vadd.f32 %v2055_v0, %v1942_v27  ;;  %v4748_v27 = vld [vmem:[#allocation49_spill] sm:$0xff] }
 0x394   :  { %v1639_v37 = vpop.f32.mrf.mxu2 }
 0x395   :  { %2157 = vst.msk [vmem:[%s4654_s4 + $0xb8] sm:$0xff] %vm2134_vm3, %v2056_v20  ;;  %1869 = vmatmul.bf16.gmra.mxu3 %v4733_v42  ;;  %v1640_v23 = vadd.f32 %v1639_v37, %v4138_v30  ;;  %v4736_v30 = vld [vmem:[#allocation8_spill] sm:$0xff] }
 0x397   :  { %v1754_v46 = vadd.f32 %v4734_v7, %v1640_v23 }
 0x398   :  { %v1830_v51 = vpop.f32.mrf.mxu3 }
 0x399   :  { %v1945_v13 = vadd.f32 %v1944_v40, %v1830_v51  ;;  %2188 = vst [vmem:[%s4654_s4 + $0x1b0] sm:$0xff] %v1754_v46  ;;  %2518 = vmatmul.msk.bf16.gmra.mxu2 %vm1385_vm2, %v4735_v11  ;;  %v4749_v46 = vld [vmem:[#allocation3_spill] sm:$0xff]  ;;  %v4750_v51 = vld [vmem:[#allocation17_spill] sm:$0xff]  ;;  %v4751_v11 = vld [vmem:[#allocation52_spill] sm:$0xff] }
 0x39a   :  { %v2058_v56 = vpop.f32.mrf.mxu1  ;;  %v1959_v24 = vpop.f32.mrf.mxu0 }
 0x39b   :  { %v2059_v44 = vadd.f32 %v2058_v56, %v1945_v13 }
 0x39c   :  { %v1642_v39 = vpop.f32.mrf.mxu2 }
 0x39d   :  { %2159 = vst.msk [vmem:[%s4654_s4 + $0xc8] sm:$0xff] %vm2134_vm3, %v2059_v44  ;;  %2552 = vmatmul.msk.bf16.gmra.mxu1 %vm1385_vm2, %v4736_v30  ;;  %v1643_v35 = vadd.f32 %v1642_v39, %v4154_v58  ;;  %v4752_v39 = vld [vmem:[#allocation55_spill] sm:$0xff] }
 0x39f   :  { %v1757_v60 = vadd.f32 %v4737_v62, %v1643_v35 }
 0x3a0   :  { %v1832_v38 = vpop.f32.mrf.mxu3 }
 0x3a1   :  { %v1947_v14 = vadd.f32 %v1946_v3, %v1832_v38  ;;  %2190 = vst [vmem:[%s4654_s4 + $0x1c0] sm:$0xff] %v1757_v60  ;;  %v4753_v38 = vld [vmem:[#allocation20_spill] sm:$0xff] }
 0x3a2   :  { %v2060_v40 = vpop.f32.mrf.mxu1  ;;  %v1961_v48 = vpop.f32.mrf.mxu0 }
 0x3a3   :  { %v2061_v18 = vadd.f32 %v2060_v40, %v1947_v14  ;;  %v4754_v14 = vld [vmem:[#allocation19_spill] sm:$0xff]  ;;  %v4755_v40 = vld [vmem:[#allocation54_spill] sm:$0xff] }
 0x3a4   :  { %v1644_v55 = vpop.f32.mrf.mxu2 }
 0x3a5   :  { %2161 = vst.msk [vmem:[%s4654_s4 + $0xd8] sm:$0xff] %vm2134_vm3, %v2061_v18  ;;  %1874 = vmatmul.bf16.gmra.mxu3 %v4738_v1  ;;  %v1645_v58 = vadd.f32 %v1644_v55, %v4165_v25  ;;  %v4741_v25 = vld [vmem:[#allocation11_spill] sm:$0xff] }
 0x3a7   :  { %v1759_v41 = vadd.f32 %v4739_v16, %v1645_v58 }
 0x3a8   :  { %v1835_v36 = vpop.f32.mrf.mxu3 }
 0x3a9   :  { %v1950_v61 = vadd.f32 %v1949_v26, %v1835_v36  ;;  %2192 = vst [vmem:[%s4654_s4 + $0x1d0] sm:$0xff] %v1759_v41  ;;  %2519 = vmatmul.msk.bf16.gmra.mxu2 %vm1385_vm2, %v4740_v21  ;;  %v4756_v36 = vld [vmem:[#allocation4_spill] sm:$0xff] }
 0x3aa   :  { %v2063_v2 = vpop.f32.mrf.mxu1  ;;  %v1964_v54 = vpop.f32.mrf.mxu0 }
 0x3ab   :  { %v2064_v3 = vadd.f32 %v2063_v2, %v1950_v61  ;;  %v4757_v61 = vld [vmem:[#allocation22_spill] sm:$0xff] }
 0x3ac   :  { %v1647_v19 = vpop.f32.mrf.mxu2 }
 0x3ad   :  { %2163 = vst.msk [vmem:[%s4654_s4 + $0xe8] sm:$0xff] %vm2134_vm3, %v2064_v3  ;;  %2553 = vmatmul.msk.bf16.gmra.mxu1 %vm1385_vm2, %v4741_v25  ;;  %v1648_v29 = vadd.f32 %v1647_v19, %v4181_v45  ;;  %v4758_v3 = vld [vmem:[#allocation57_spill] sm:$0xff] }
 0x3af   :  { %v1762_v50 = vadd.f32 %v4742_v6, %v1648_v29 }
 0x3b0   :  { %v1837_v5 = vpop.f32.mrf.mxu3 }
 0x3b1   :  { %v1952_v31 = vadd.f32 %v1951_v12, %v1837_v5  ;;  %2194 = vst [vmem:[%s4654_s4 + $0x1e0] sm:$0xff] %v1762_v50  ;;  %v4759_v5 = vld [vmem:[#allocation25_spill] sm:$0xff] }
 0x3b2   :  { %v2065_v26 = vpop.f32.mrf.mxu1  ;;  %v1966_v12 = vpop.f32.mrf.mxu0 }
 0x3b3   :  { %v2066_v17 = vadd.f32 %v2065_v26, %v1952_v31  ;;  %v4760_v31 = vld [vmem:[#allocation24_spill] sm:$0xff] }
 0x3b4   :  { %v1649_v47 = vpop.f32.mrf.mxu2 }
 0x3b5   :  { %2165 = vst.msk [vmem:[%s4654_s4 + $0xf8] sm:$0xff] %vm2134_vm3, %v2066_v17  ;;  %1879 = vmatmul.bf16.gmra.mxu3 %v4743_v57  ;;  %v1650_v45 = vadd.f32 %v1649_v47, %v4194_v10  ;;  %v4746_v10 = vld [vmem:[#allocation15_spill] sm:$0xff] }
 0x3b7   :  { %v1764_v59 = vadd.f32 %v4744_v15, %v1650_v45 }
 0x3b8   :  { %v1840_v33 = vpop.f32.mrf.mxu3 }
 0x3b9   :  { %v1955_v49 = vadd.f32 %v1954_v9, %v1840_v33  ;;  %2196 = vst [vmem:[%s4654_s4 + $0x1f0] sm:$0xff] %v1764_v59  ;;  %2520 = vmatmul.msk.bf16.gmra.mxu2 %vm1385_vm2, %v4745_v8  ;;  %v4761_v33 = vld [vmem:[#allocation5_spill] sm:$0xff] }
 0x3ba   :  { %v2068_v32 = vpop.f32.mrf.mxu1  ;;  %v1969_v42 = vpop.f32.mrf.mxu0 }
 0x3bb   :  { %v2069_v63 = vadd.f32 %v2068_v32, %v1955_v49  ;;  %v4762_v49 = vld [vmem:[#allocation27_spill] sm:$0xff] }
 0x3bc   :  { %v1652_v4 = vpop.f32.mrf.mxu2 }
 0x3bd   :  { %2167 = vst.msk [vmem:[%s4654_s4 + $0x108] sm:$0xff] %vm2134_vm3, %v2069_v63  ;;  %2554 = vmatmul.msk.bf16.gmra.mxu1 %vm1385_vm2, %v4746_v10  ;;  %v1653_v34 = vadd.f32 %v1652_v4, %v4747_v52 }
 0x3bf   :  { %v1767_v9 = vadd.f32 %v4748_v27, %v1653_v34  ;;  %v4764_v27 = vld [vmem:[#allocation28_spill] sm:$0xff] }
 0x3c0   :  { %v1842_v0 = vpop.f32.mrf.mxu3 }
 0x3c1   :  { %v1957_v20 = vadd.f32 %v1956_v53, %v1842_v0  ;;  %2198 = vst [vmem:[%s4654_s4 + $0x200] sm:$0xff] %v1767_v9  ;;  %v4765_v9 = vld [vmem:[#allocation29_spill] sm:$0xff] }
 0x3c2   :  { %v2070_v37 = vpop.f32.mrf.mxu1  ;;  %v1971_v62 = vpop.f32.mrf.mxu0 }
 0x3c3   :  { %v2071_v23 = vadd.f32 %v2070_v37, %v1957_v20 }
 0x3c4   :  { %v1654_v7 = vpop.f32.mrf.mxu2 }
 0x3c5   :  { %2169 = vst.msk [vmem:[%s4654_s4 + $0x118] sm:$0xff] %vm2134_vm3, %v2071_v23  ;;  %1884 = vmatmul.bf16.gmra.mxu3 %v4749_v46  ;;  %v1655_v13 = vadd.f32 %v1654_v7, %v4750_v51 }
 0x3c7   :  { %v1769_v56 = vadd.f32 %v4751_v11, %v1655_v13  ;;  %v4766_v13 = vld [vmem:[#allocation6_spill] sm:$0xff]  ;;  %v4767_v11 = vld [vmem:[#allocation31_spill] sm:$0xff] }
 0x3c8   :  { %v1845_v53 = vpop.f32.mrf.mxu3 }
 0x3c9   :  { %v1960_v44 = vadd.f32 %v1959_v24, %v1845_v53  ;;  %2200 = vst [vmem:[%s4654_s4 + $0x210] sm:$0xff] %v1769_v56  ;;  %2521 = vmatmul.msk.bf16.gmra.mxu2 %vm1385_vm2, %v4752_v39 }
 0x3ca   :  { %v2073_v30 = vpop.f32.mrf.mxu1  ;;  %v1974_v2 = vpop.f32.mrf.mxu0 }
 0x3cb   :  { %v2074_v35 = vadd.f32 %v2073_v30, %v1960_v44 }
 0x3cc   :  { %v1657_v60 = vpop.f32.mrf.mxu2 }
 0x3cd   :  { %2171 = vst.msk [vmem:[%s4654_s4 + $0x128] sm:$0xff] %vm2134_vm3, %v2074_v35  ;;  %2555 = vmatmul.msk.bf16.gmra.mxu1 %vm1385_vm2, %v4753_v38  ;;  %v1658_v24 = vadd.f32 %v1657_v60, %v4754_v14  ;;  %v4769_v60 = vld [vmem:[#allocation33_spill] sm:$0xff]  ;;  %v4770_v14 = vld [vmem:[#allocation60_spill] sm:$0xff] }
 0x3cf   :  { %v1772_v18 = vadd.f32 %v4755_v40, %v1658_v24 }
 0x3d0   :  { %v1847_v55 = vpop.f32.mrf.mxu3 }
 0x3d1   :  { %v1962_v1 = vadd.f32 %v1961_v48, %v1847_v55  ;;  %2202 = vst [vmem:[%s4654_s4 + $0x220] sm:$0xff] %v1772_v18 }
 0x3d2   :  { %v2075_v58 = vpop.f32.mrf.mxu1  ;;  %v1976_v47 = vpop.f32.mrf.mxu0 }
 0x3d3   :  { %v2076_v16 = vadd.f32 %v2075_v58, %v1962_v1 }
 0x3d4   :  { %v1659_v41 = vpop.f32.mrf.mxu2 }
 0x3d5   :  { %2173 = vst.msk [vmem:[%s4654_s4 + $0x138] sm:$0xff] %vm2134_vm3, %v2076_v16  ;;  %1889 = vmatmul.bf16.gmra.mxu3 %v4756_v36  ;;  %v1660_v21 = vadd.f32 %v1659_v41, %v4757_v61  ;;  %v4771_v16 = vld [vmem:[#allocation35_spill] sm:$0xff]  ;;  %v4772_v36 = vld [vmem:[#allocation61_spill] sm:$0xff] }
 0x3d7   :  { %v1774_v19 = vadd.f32 %v4758_v3, %v1660_v21 }
 0x3d8   :  { %v1850_v48 = vpop.f32.mrf.mxu3 }
 0x3d9   :  { %v1965_v25 = vadd.f32 %v1964_v54, %v1850_v48  ;;  %2204 = vst [vmem:[%s4654_s4 + $0x230] sm:$0xff] %v1774_v19 }
 0x3da   :  { %v2078_v29 = vpop.f32.mrf.mxu1  ;;  %v1979_v10 = vpop.f32.mrf.mxu0 }
 0x3db   :  { %v2079_v6 = vadd.f32 %v2078_v29, %v1965_v25  ;;  %v4773_v25 = vld [vmem:[#allocation7_spill] sm:$0xff]  ;;  %v4774_v29 = vld [vmem:[#allocation36_spill] sm:$0xff] }
 0x3dc   :  { %v1662_v50 = vpop.f32.mrf.mxu2 }
 0x3dd   :  { %2175 = vst.msk [vmem:[%s4654_s4 + $0x148] sm:$0xff] %vm2134_vm3, %v2079_v6  ;;  %2556 = vmatmul.msk.bf16.gmra.mxu1 %vm1385_vm2, %v4759_v5  ;;  %v1663_v26 = vadd.f32 %v1662_v50, %v4760_v31  ;;  %v1573_v6 = vadd.f32 %v4774_v29, %v4773_v25 }
 0x3df   :  { %v1777_v17 = vadd.f32 %v4125_v43, %v1663_v26  ;;  %v4763_v43 = vld [vmem:[#allocation59_spill] sm:$0xff] }
 0x3e0   :  { %v1852_v54 = vpop.f32.mrf.mxu3 }
 0x3e1   :  { %v1967_v57 = vadd.f32 %v1966_v12, %v1852_v54  ;;  %2206 = vst [vmem:[%s4654_s4 + $0x240] sm:$0xff] %v1777_v17 }
 0x3e2   :  { %v2080_v45 = vpop.f32.mrf.mxu1  ;;  %v1981_v46 = vpop.f32.mrf.mxu0 }
 0x3e3   :  { %v2081_v15 = vadd.f32 %v2080_v45, %v1967_v57  ;;  %v4775_v57 = vld [vmem:[#allocation9_spill] sm:$0xff]  ;;  %v4776_v45 = vld [vmem:[#allocation38_spill] sm:$0xff] }
 0x3e4   :  { %v1664_v59 = vpop.f32.mrf.mxu2 }
 0x3e5   :  { %2177 = vst.msk [vmem:[%s4654_s4 + $0x158] sm:$0xff] %vm2134_vm3, %v2081_v15  ;;  %1894 = vmatmul.bf16.gmra.mxu3 %v4761_v33  ;;  %v1665_v8 = vadd.f32 %v1664_v59, %v4762_v49  ;;  %v1575_v15 = vadd.f32 %v4776_v45, %v4775_v57 }
 0x3e7   :  { %v1779_v32 = vadd.f32 %v4763_v43, %v1665_v8 }
 0x3e8   :  { %v1855_v63 = vpop.f32.mrf.mxu3 }
 0x3e9   :  { %v1970_v12 = vadd.f32 %v1969_v42, %v1855_v63  ;;  %2208 = vst [vmem:[%s4654_s4 + $0x250] sm:$0xff] %v1779_v32  ;;  %v4777_v63 = vld [vmem:[#allocation10_spill] sm:$0xff] }
 0x3ea   :  { %v2083_v4 = vpop.f32.mrf.mxu1 }
 0x3eb   :  { %v2084_v52 = vadd.f32 %v2083_v4, %v1970_v12  ;;  %v4778_v12 = vld [vmem:[#allocation41_spill] sm:$0xff] }
 0x3ec   :  { %v1667_v34 = vpop.f32.mrf.mxu2  ;;  %v1578_v4 = vadd.f32 %v4778_v12, %v4777_v63 }
 0x3ed   :  { %2179 = vst.msk [vmem:[%s4654_s4 + $0x168] sm:$0xff] %vm2134_vm3, %v2084_v52  ;;  %2557 = vmatmul.msk.bf16.gmra.mxu1 %vm1385_vm2, %v4764_v27  ;;  %v1668_v0 = vadd.f32 %v1667_v34, %v4765_v9 }
 0x3ef   :  { %v1782_v20 = vadd.f32 %v4149_v28, %v1668_v0 }
 0x3f0   :  { %v1857_v37 = vpop.f32.mrf.mxu3 }
 0x3f1   :  { %v1972_v42 = vadd.f32 %v1971_v62, %v1857_v37  ;;  %2210 = vst [vmem:[%s4654_s4 + $0x260] sm:$0xff] %v1782_v20  ;;  %v4768_v62 = vld [vmem:[#allocation32_spill] sm:$0xff] }
 0x3f2   :  { %v2085_v23 = vpop.f32.mrf.mxu1  ;;  %v4779_v37 = vld [vmem:[#allocation12_spill] sm:$0xff] }
 0x3f3   :  { %v2086_v7 = vadd.f32 %v2085_v23, %v1972_v42  ;;  %v4780_v42 = vld [vmem:[#allocation43_spill] sm:$0xff] }
 0x3f4   :  { %v1669_v51 = vpop.f32.mrf.mxu2  ;;  %v1580_v23 = vadd.f32 %v4780_v42, %v4779_v37 }
 0x3f5   :  { %2181 = vst.msk [vmem:[%s4654_s4 + $0x178] sm:$0xff] %vm2134_vm3, %v2086_v7  ;;  %1899 = vmatmul.bf16.gmra.mxu3 %v4766_v13  ;;  %v1670_v56 = vadd.f32 %v1669_v51, %v4767_v11 }
 0x3f7   :  { %v1784_v28 = vadd.f32 %v4160_v22, %v1670_v56  ;;  %v1984_v22 = vpop.f32.mrf.mxu0 }
 0x3f8   :  { %v1860_v53 = vpop.f32.mrf.mxu3 }
 0x3f9   :  { %v1975_v44 = vadd.f32 %v1974_v2, %v1860_v53  ;;  %2212 = vst [vmem:[%s4654_s4 + $0x270] sm:$0xff] %v1784_v28  ;;  %v4781_v53 = vld [vmem:[#allocation14_spill] sm:$0xff] }
 0x3fa   :  { %v2088_v39 = vpop.f32.mrf.mxu1 }
 0x3fb   :  { %v2089_v30 = vadd.f32 %v2088_v39, %v1975_v44  ;;  %v4782_v44 = vld [vmem:[#allocation46_spill] sm:$0xff] }
 0x3fc   :  { %v1672_v35 = vpop.f32.mrf.mxu2  ;;  %v1583_v39 = vadd.f32 %v4782_v44, %v4781_v53 }
 0x3fd   :  { %2183 = vst.msk [vmem:[%s4654_s4 + $0x188] sm:$0xff] %vm2134_vm3, %v2089_v30  ;;  %2558 = vmatmul.msk.bf16.gmra.mxu1 %vm1385_vm2, %v4768_v62  ;;  %v1673_v38 = vadd.f32 %v1672_v35, %v4769_v60 }
 0x3ff   :  { %v1787_v24 = vadd.f32 %v4770_v14, %v1673_v38  ;;  %v1986_v2 = vpop.f32.mrf.mxu0 }
 0x400   :  { %v1862_v40 = vpop.f32.mrf.mxu3 }
 0x401   :  { %v1977_v18 = vadd.f32 %v1976_v47, %v1862_v40  ;;  %2214 = vst [vmem:[%s4654_s4 + $0x280] sm:$0xff] %v1787_v24  ;;  %v4783_v24 = vld [vmem:[#allocation16_spill] sm:$0xff] }
 0x402   :  { %v2090_v55 = vpop.f32.mrf.mxu1  ;;  %v4784_v40 = vld [vmem:[#allocation48_spill] sm:$0xff] }
 0x403   :  { %v2091_v1 = vadd.f32 %v2090_v55, %v1977_v18  ;;  %v1585_v18 = vadd.f32 %v4784_v40, %v4783_v24 }
 0x404   :  { %v1674_v58 = vpop.f32.mrf.mxu2 }
 0x405   :  { %2185 = vst.msk [vmem:[%s4654_s4 + $0x198] sm:$0xff] %vm2134_vm3, %v2091_v1  ;;  %v1675_v41 = vadd.f32 %v1674_v58, %v4771_v16 }
 0x407   :  { %v1789_v61 = vadd.f32 %v4772_v36, %v1675_v41  ;;  %v1989_v54 = vpop.f32.mrf.mxu0 }
 0x408   :  { %v1865_v21 = vpop.f32.mrf.mxu3 }
 0x409   :  { %v1980_v3 = vadd.f32 %v1979_v10, %v1865_v21  ;;  %2216 = vst [vmem:[%s4654_s4 + $0x290] sm:$0xff] %v1789_v61  ;;  %v4785_v21 = vld [vmem:[#allocation18_spill] sm:$0xff] }
 0x40a   :  { %v2093_v19 = vpop.f32.mrf.mxu1 }
 0x40b   :  { %v2094_v48 = vadd.f32 %v2093_v19, %v1980_v3 }
 0x40c   :  { %v1686_v50 = vpop.f32.mrf.mxu2 }
 0x40d   :  { %2187 = vst.msk [vmem:[%s4654_s4 + $0x1a8] sm:$0xff] %vm2134_vm3, %v2094_v48  ;;  %v1687_v5 = vadd.f32 %v1686_v50, %v1573_v6 }
 0x40f   :  { %2133 = vst [vmem:[%s4654_s4] sm:$0xff] %v1687_v5  ;;  %v1991_v10 = vpop.f32.mrf.mxu0  ;;  %v4787_v5 = vld [vmem:[#allocation21_spill] sm:$0xff] }
 0x410   :  { %v1867_v31 = vpop.f32.mrf.mxu3 }
 0x411   :  { %v1982_v26 = vadd.f32 %v1981_v46, %v1867_v31  ;;  %v4788_v31 = vld [vmem:[#allocation53_spill] sm:$0xff] }
 0x412   :  { %v2095_v17 = vpop.f32.mrf.mxu1 }
 0x413   :  { %v2096_v47 = vadd.f32 %v2095_v17, %v1982_v26  ;;  %v1590_v26 = vadd.f32 %v4788_v31, %v4787_v5 }
 0x414   :  { %v1688_v59 = vpop.f32.mrf.mxu2 }
 0x415   :  { %2189 = vst.msk [vmem:[%s4654_s4 + $0x1b8] sm:$0xff] %vm2134_vm3, %v2096_v47  ;;  %v1689_v33 = vadd.f32 %v1688_v59, %v1575_v15 }
 0x417   :  { %2136 = vst [vmem:[%s4654_s4 + $0x10] sm:$0xff] %v1689_v33  ;;  %v1994_v51 = vpop.f32.mrf.mxu0  ;;  %v4789_v33 = vld [vmem:[#allocation23_spill] sm:$0xff] }
 0x418   :  { %v1870_v49 = vpop.f32.mrf.mxu3 }
 0x419   :  { %v1985_v8 = vadd.f32 %v1984_v22, %v1870_v49  ;;  %v4790_v49 = vld [vmem:[#allocation56_spill] sm:$0xff] }
 0x41a   :  { %v2098_v43 = vpop.f32.mrf.mxu1 }
 0x41b   :  { %v2099_v32 = vadd.f32 %v2098_v43, %v1985_v8  ;;  %v1593_v8 = vadd.f32 %v4790_v49, %v4789_v33 }
 0x41c   :  { %v1691_v52 = vpop.f32.mrf.mxu2 }
 0x41d   :  { %2191 = vst.msk [vmem:[%s4654_s4 + $0x1c8] sm:$0xff] %vm2134_vm3, %v2099_v32  ;;  %v1692_v34 = vadd.f32 %v1691_v52, %v1578_v4 }
 0x41f   :  { %2138 = vst [vmem:[%s4654_s4 + $0x20] sm:$0xff] %v1692_v34  ;;  %v1996_v60 = vpop.f32.mrf.mxu0  ;;  %v4791_v34 = vld [vmem:[#allocation26_spill] sm:$0xff] }
 0x420   :  { %v1872_v27 = vpop.f32.mrf.mxu3 }
 0x421   :  { %v1987_v9 = vadd.f32 %v1986_v2, %v1872_v27  ;;  %v4786_v2 = vld [vmem:[#allocation51_spill] sm:$0xff]  ;;  %v4792_v27 = vld [vmem:[#allocation58_spill] sm:$0xff] }
 0x422   :  { %v2100_v0 = vpop.f32.mrf.mxu1  ;;  %v1588_v3 = vadd.f32 %v4786_v2, %v4785_v21 }
 0x423   :  { %v2101_v20 = vadd.f32 %v2100_v0, %v1987_v9  ;;  %v1595_v9 = vadd.f32 %v4792_v27, %v4791_v34 }
 0x424   :  { %v1693_v7 = vpop.f32.mrf.mxu2 }
 0x425   :  { %2193 = vst.msk [vmem:[%s4654_s4 + $0x1d8] sm:$0xff] %vm2134_vm3, %v2101_v20  ;;  %v1694_v46 = vadd.f32 %v1693_v7, %v1580_v23 }
 0x427   :  { %2140 = vst [vmem:[%s4654_s4 + $0x30] sm:$0xff] %v1694_v46  ;;  %v1999_v36 = vpop.f32.mrf.mxu0 }
 0x428   :  { %v1875_v13 = vpop.f32.mrf.mxu3 }
 0x429   :  { %v1990_v11 = vadd.f32 %v1989_v54, %v1875_v13 }
 0x42a   :  { %v2103_v56 = vpop.f32.mrf.mxu1 }
 0x42b   :  { %v2104_v28 = vadd.f32 %v2103_v56, %v1990_v11 }
 0x42c   :  { %v1696_v30 = vpop.f32.mrf.mxu2 }
 0x42d   :  { %2195 = vst.msk [vmem:[%s4654_s4 + $0x1e8] sm:$0xff] %vm2134_vm3, %v2104_v28  ;;  %v1697_v35 = vadd.f32 %v1696_v30, %v1583_v39 }
 0x42f   :  { %2142 = vst [vmem:[%s4654_s4 + $0x40] sm:$0xff] %v1697_v35  ;;  %v2001_v17 = vpop.f32.mrf.mxu0 }
 0x430   :  { %v1877_v62 = vpop.f32.mrf.mxu3 }
 0x431   :  { %v1992_v38 = vadd.f32 %v1991_v10, %v1877_v62 }
 0x432   :  { %v2105_v22 = vpop.f32.mrf.mxu1 }
 0x433   :  { %v2106_v14 = vadd.f32 %v2105_v22, %v1992_v38 }
 0x434   :  { %v1698_v55 = vpop.f32.mrf.mxu2 }
 0x435   :  { %2197 = vst.msk [vmem:[%s4654_s4 + $0x1f8] sm:$0xff] %vm2134_vm3, %v2106_v14  ;;  %v1699_v1 = vadd.f32 %v1698_v55, %v1585_v18 }
 0x437   :  { %2144 = vst [vmem:[%s4654_s4 + $0x50] sm:$0xff] %v1699_v1  ;;  %v2004_v63 = vpop.f32.mrf.mxu0 }
 0x438   :  { %v1880_v58 = vpop.f32.mrf.mxu3 }
 0x439   :  { %v1995_v16 = vadd.f32 %v1994_v51, %v1880_v58 }
 0x43a   :  { %v2108_v41 = vpop.f32.mrf.mxu1 }
 0x43b   :  { %v2109_v61 = vadd.f32 %v2108_v41, %v1995_v16 }
 0x43c   :  { %v1701_v19 = vpop.f32.mrf.mxu2 }
 0x43d   :  { %2199 = vst.msk [vmem:[%s4654_s4 + $0x208] sm:$0xff] %vm2134_vm3, %v2109_v61  ;;  %v1702_v48 = vadd.f32 %v1701_v19, %v1588_v3 }
 0x43f   :  { %2146 = vst [vmem:[%s4654_s4 + $0x60] sm:$0xff] %v1702_v48  ;;  %v2006_v42 = vpop.f32.mrf.mxu0 }
 0x440   :  { %v1882_v25 = vpop.f32.mrf.mxu3 }
 0x441   :  { %v1997_v29 = vadd.f32 %v1996_v60, %v1882_v25 }
 0x442   :  { %v2110_v6 = vpop.f32.mrf.mxu1 }
 0x443   :  { %v2111_v50 = vadd.f32 %v2110_v6, %v1997_v29 }
 0x444   :  { %v1703_v54 = vpop.f32.mrf.mxu2 }
 0x445   :  { %2201 = vst.msk [vmem:[%s4654_s4 + $0x218] sm:$0xff] %vm2134_vm3, %v2111_v50  ;;  %v1704_v47 = vadd.f32 %v1703_v54, %v1590_v26 }
 0x447   :  { %2148 = vst [vmem:[%s4654_s4 + $0x70] sm:$0xff] %v1704_v47  ;;  %v2009_v56 = vpop.f32.mrf.mxu0 }
 0x448   :  { %v1885_v57 = vpop.f32.mrf.mxu3 }
 0x449   :  { %v2000_v45 = vadd.f32 %v1999_v36, %v1885_v57 }
 0x44a   :  { %v2113_v15 = vpop.f32.mrf.mxu1 }
 0x44b   :  { %v2114_v59 = vadd.f32 %v2113_v15, %v2000_v45 }
 0x44c   :  { %v1706_v43 = vpop.f32.mrf.mxu2 }
 0x44d   :  { %2203 = vst.msk [vmem:[%s4654_s4 + $0x228] sm:$0xff] %vm2134_vm3, %v2114_v59  ;;  %v1707_v32 = vadd.f32 %v1706_v43, %v1593_v8 }
 0x44f   :  { %2150 = vst [vmem:[%s4654_s4 + $0x80] sm:$0xff] %v1707_v32  ;;  %v2011_v35 = vpop.f32.mrf.mxu0 }
 0x450   :  { %v1887_v12 = vpop.f32.mrf.mxu3 }
 0x451   :  { %v2002_v4 = vadd.f32 %v2001_v17, %v1887_v12 }
 0x452   :  { %v2115_v10 = vpop.f32.mrf.mxu1 }
 0x453   :  { %v2116_v52 = vadd.f32 %v2115_v10, %v2002_v4 }
 0x454   :  { %v1708_v0 = vpop.f32.mrf.mxu2 }
 0x455   :  { %2205 = vst.msk [vmem:[%s4654_s4 + $0x238] sm:$0xff] %vm2134_vm3, %v2116_v52  ;;  %v1709_v20 = vadd.f32 %v1708_v0, %v1595_v9 }
 0x457   :  { %2152 = vst [vmem:[%s4654_s4 + $0x90] sm:$0xff] %v1709_v20  ;;  %v2014_v14 = vpop.f32.mrf.mxu0 }
 0x458   :  { %v1890_v37 = vpop.f32.mrf.mxu3 }
 0x459   :  { %v2005_v23 = vadd.f32 %v2004_v63, %v1890_v37 }
 0x45a   :  { %v2118_v7 = vpop.f32.mrf.mxu1 }
 0x45b   :  { %v2119_v46 = vadd.f32 %v2118_v7, %v2005_v23 }
 0x45d   :  { %2207 = vst.msk [vmem:[%s4654_s4 + $0x248] sm:$0xff] %vm2134_vm3, %v2119_v46 }
 0x45f   :  { %v2016_v58 = vpop.f32.mrf.mxu0 }
 0x460   :  { %v1892_v51 = vpop.f32.mrf.mxu3 }
 0x461   :  { %v2007_v13 = vadd.f32 %v2006_v42, %v1892_v51 }
 0x462   :  { %v2120_v11 = vpop.f32.mrf.mxu1 }
 0x463   :  { %v2121_v28 = vadd.f32 %v2120_v11, %v2007_v13 }
 0x465   :  { %2209 = vst.msk [vmem:[%s4654_s4 + $0x258] sm:$0xff] %vm2134_vm3, %v2121_v28 }
 0x468   :  { %v1895_v53 = vpop.f32.mrf.mxu3 }
 0x469   :  { %v2010_v44 = vadd.f32 %v2009_v56, %v1895_v53 }
 0x46a   :  { %v2123_v39 = vpop.f32.mrf.mxu1 }
 0x46b   :  { %v2124_v30 = vadd.f32 %v2123_v39, %v2010_v44 }
 0x46d   :  { %2211 = vst.msk [vmem:[%s4654_s4 + $0x268] sm:$0xff] %vm2134_vm3, %v2124_v30 }
 0x470   :  { %v1897_v62 = vpop.f32.mrf.mxu3 }
 0x471   :  { %v2012_v60 = vadd.f32 %v2011_v35, %v1897_v62 }
 0x472   :  { %v2125_v38 = vpop.f32.mrf.mxu1 }
 0x473   :  { %v2126_v22 = vadd.f32 %v2125_v38, %v2012_v60 }
 0x475   :  { %2213 = vst.msk [vmem:[%s4654_s4 + $0x278] sm:$0xff] %vm2134_vm3, %v2126_v22 }
 0x478   :  { %v1900_v24 = vpop.f32.mrf.mxu3 }
 0x479   :  { %v2015_v40 = vadd.f32 %v2014_v14, %v1900_v24 }
 0x47a   :  { %v2128_v18 = vpop.f32.mrf.mxu1 }
 0x47b   :  { %v2129_v55 = vadd.f32 %v2128_v18, %v2015_v40 }
 0x47d   :  { %2215 = vst.msk [vmem:[%s4654_s4 + $0x288] sm:$0xff] %vm2134_vm3, %v2129_v55 }
 0x480   :  { %v1902_v1 = vpop.f32.mrf.mxu3 }
 0x481   :  { %v2017_v16 = vadd.f32 %v2016_v58, %v1902_v1 }
 0x482   :  { %v2130_v41 = vpop.f32.mrf.mxu1 }
 0x483   :  { %v2131_v36 = vadd.f32 %v2130_v41, %v2017_v16 }
 0x485   :  { %2217 = vst.msk [vmem:[%s4654_s4 + $0x298] sm:$0xff] %vm2134_vm3, %v2131_v36 }

</bundles_post_ra>
